<compile_context>
chip_gen: v7x
topology: tpu7x:2x2x1
jax: 0.10.0
libtpu: 0.0.40
codegen_flags: <defaults>
</compile_context>

<pallas_src>
import functools

import jax
import jax.numpy as jnp
from jax.experimental import pallas as pl
from jax.experimental.pallas import tpu as pltpu

# Padding coordinate for remainder tiles: squared distances to padded points
# are ~1e12, far larger than any real distance, so they never win a min.
_PAD = 1.0e6


def _cdiv(a, b):
    return -(-a // b)


def _round_up(a, b):
    return _cdiv(a, b) * b


def _pick_tsm(tm, pref):
    """Largest multiple of 128 <= pref that divides tm (tm is a multiple of 128)."""
    t = min(pref, tm)
    while tm % t:
        t -= 128
    return t


def _default_config():
    """Generation-aware tile defaults keyed off VMEM capacity."""
    vmem_cap = 128 * 1024 * 1024
    try:
        info = pltpu.get_tpu_info()
        vmem_cap = int(getattr(info, "vmem_capacity_bytes", vmem_cap))
    except Exception:  # pragma: no cover - e.g. interpret mode / CPU
        pass
    if vmem_cap <= 96 * 1024 * 1024:
        # v7x-class: 64 MiB per TensorCore -> smaller tiles, smaller strips,
        # conservative scoped-VMEM request.
        return dict(tn=1024, tm=1024, tsm=256, vmem_limit=36 * 1024 * 1024)
    # v5e / v6e: 128 MiB -> larger tm amortizes the ~0.35us/step overhead.
    return dict(tn=1024, tm=4096, tsm=512, vmem_limit=64 * 1024 * 1024)


def _min_dist_kernel(x_ref, yt_ref, d1_ref, d2_ref, d2_scr, *, tsm):
    # Grid: (batch, split, N-tiles, M-tiles), M innermost.
    # x_ref : (1, TN, 3)      tile of S1 points (this split's N range)
    # yt_ref: (1, 3, TM)      tile of S2 points, coordinate-major
    # d1_ref: (1, 1, TN)      running min_j ||x_i - y_j||^2 (resident across M)
    # d2_ref: (1, 1, 1, TM)   this split's partial min_i ||x_i - y_j||^2
    # d2_scr: (M_tiles, 1, TM) persistent col-min accumulator (per split pass)
    n = pl.program_id(2)
    m = pl.program_id(3)

    tn = x_ref.shape[1]
    tm = yt_ref.shape[2]
    num_strips = tm // tsm

    # d1 output block is resident across the innermost m axis: init once.
    @pl.when(m == 0)
    def _():
        d1_ref[...] = jnp.full(d1_ref.shape, jnp.inf, dtype=jnp.float32)

    # d2 scratch accumulates the column-min across the n axis: init at n == 0.
    @pl.when(n == 0)
    def _():
        d2_scr[m] = jnp.full((1, tm), jnp.inf, dtype=jnp.float32)

    x = x_ref[0].astype(jnp.float32)            # (TN, 3)
    x0 = x[:, 0:1]
    x1 = x[:, 1:2]
    x2 = x[:, 2:3]

    def strip(s, rowmin):
        # One lane strip: a single fused squared-distance expression feeding
        # straight into the min folds -> nothing larger than (TN, TSM) live.
        off = pl.multiple_of(s * tsm, tsm)
        yts = yt_ref[0, :, pl.ds(off, tsm)].astype(jnp.float32)   # (3, TSM)
        d0 = x0 - yts[0:1, :]
        d1v = x1 - yts[1:2, :]
        d2v = x2 - yts[2:3, :]
        sqd = d0 * d0 + d1v * d1v + d2v * d2v                     # (TN, TSM)
        rowmin = jnp.minimum(rowmin, jnp.min(sqd, axis=1, keepdims=True))
        colmin = jnp.min(sqd, axis=0, keepdims=True)              # (1, TSM)
        d2_scr[m, :, pl.ds(off, tsm)] = jnp.minimum(
            d2_scr[m, :, pl.ds(off, tsm)], colmin)
        return rowmin

    rowmin0 = jnp.full((tn, 1), jnp.inf, dtype=jnp.float32)
    rowmin = jax.lax.fori_loop(0, num_strips, strip, rowmin0)

    # d1: running min across m; the output block is resident so fold in place
    # (single sublane->lane relayout per tile).
    d1_ref[0, 0, :] = jnp.minimum(d1_ref[0, 0, :], rowmin[:, 0])

    # d2: write the current partial unconditionally every step; the last visit
    # for this (b, split, m) block carries the full min over this split's N
    # tiles.  Never writes back stale/uninitialized buffer contents.
    d2_ref[0, 0] = d2_scr[m]


def pairwise_min_dists(x, y, *, tn=None, tm=None, tsm=None, n_splits=2,
                       vmem_limit_bytes=None):
    """Returns (d1, d2): per-point min squared distances x->y (B,N) and y->x (B,M)."""
    B, N, dx = x.shape
    By, M, dy = y.shape
    assert B == By and dx == 3 and dy == 3

    cfg = _default_config()
    tn = cfg["tn"] if tn is None else tn
    tm = cfg["tm"] if tm is None else tm
    tsm_pref = cfg["tsm"] if tsm is None else tsm
    if vmem_limit_bytes is None:
        vmem_limit_bytes = cfg["vmem_limit"]

    assert tn % 128 == 0 and tm % 128 == 0, "tile sizes must be multiples of 128"
    tn = min(tn, _round_up(N, 8))        # multiple of 128, or == padded N (1 tile)
    tm = min(tm, _round_up(M, 128))      # always a multiple of 128
    tsm = _pick_tsm(tm, tsm_pref)

    n_tiles_raw = _cdiv(N, tn)
    n_splits_eff = max(1, min(n_splits, n_tiles_raw))
    n_half = _cdiv(n_tiles_raw, n_splits_eff)     # N tiles handled per split
    n_tiles = n_half * n_splits_eff
    n_pad = n_tiles * tn
    m_pad = _round_up(M, tm)
    m_tiles = m_pad // tm

    xp = x if n_pad == N else jnp.pad(
        x, ((0, 0), (0, n_pad - N), (0, 0)), constant_values=_PAD)
    yp = y if m_pad == M else jnp.pad(
        y, ((0, 0), (0, m_pad - M), (0, 0)), constant_values=_PAD)
    y_t = jnp.transpose(yp, (0, 2, 1))  # (B, 3, Mpad), coordinate-major

    kernel = functools.partial(_min_dist_kernel, tsm=tsm)

    cost = pl.CostEstimate(
        flops=11 * B * n_pad * m_pad,
        transcendentals=0,
        bytes_accessed=4 * B * (3 * n_pad + 3 * n_tiles * m_pad
                                + n_pad + n_tiles * m_pad),
    )

    d1, d2p = pl.pallas_call(
        kernel,
        out_shape=(
            jax.ShapeDtypeStruct((B, 1, n_pad), jnp.float32),              # lane-dense d1
            jax.ShapeDtypeStruct((n_splits_eff, B, 1, m_pad), jnp.float32),  # d2 partials
        ),
        grid_spec=pltpu.PrefetchScalarGridSpec(
            num_scalar_prefetch=0,
            grid=(B, n_splits_eff, n_half, m_tiles),
            in_specs=[
                pl.BlockSpec((1, tn, 3), lambda b, c, n, m: (b, c * n_half + n, 0)),
                pl.BlockSpec((1, 3, tm), lambda b, c, n, m: (b, 0, m)),
            ],
            out_specs=[
                pl.BlockSpec((1, 1, tn), lambda b, c, n, m: (b, 0, c * n_half + n)),
                pl.BlockSpec((1, 1, 1, tm), lambda b, c, n, m: (c, b, 0, m)),
            ],
            scratch_shapes=[pltpu.VMEM((m_tiles, 1, tm), jnp.float32)],
        ),
        compiler_params=pltpu.CompilerParams(
            # batch and split shard across v7x's two TensorCores (so B==1 or
            # odd B still keeps both busy); both tile axes carry reductions.
            dimension_semantics=("parallel", "parallel", "arbitrary", "arbitrary"),
            vmem_limit_bytes=vmem_limit_bytes,
        ),
        cost_estimate=cost,
    )(xp, y_t)

    d1 = d1[:, 0, :N]
    d2 = jnp.min(d2p, axis=0)[:, 0, :M]   # combine per-split partials
    return d1, d2


def _masked_mean(d, z_index):
    # Equivalent of mask_by_Z followed by .mean().
    # torch.std_mean uses the unbiased (ddof=1) std; NaN if only 1 element,
    # matching torch semantics.
    mean = jnp.mean(d)
    std = jnp.std(d, ddof=1)
    mask = (d - mean) > (-z_index * std)
    cnt = jnp.sum(mask.astype(jnp.float32))
    return jnp.sum(jnp.where(mask, d, 0.0)) / cnt


def max_chamfer_distance(x, y, z_index=0.5, *, tn=None, tm=None):
    """Forward pass of MaxChamferDistance.  x: (B, N, 3), y: (B, M, 3)."""
    d1, d2 = pairwise_min_dists(x, y, tn=tn, tm=tm)     # hot path in Pallas
    per_batch = jax.vmap(
        lambda a, b: _masked_mean(a, z_index) + _masked_mean(b, z_index)
    )(d1, d2)                                           # (B,)
    return jnp.mean(per_batch)


# ----------------------------- pure-JAX reference -----------------------------
def _reference_dists(x, y):
    def per_batch(xb, yb):
        sqd = jnp.sum((xb[:, None, :] - yb[None, :, :]) ** 2, axis=-1)
        return jnp.min(sqd, axis=1), jnp.min(sqd, axis=0)
    return jax.vmap(per_batch)(x, y)


def _reference_loss(x, y, z_index=0.5):
    r1, r2 = _reference_dists(x, y)
    per_batch = jax.vmap(
        lambda a, b: _masked_mean(a, z_index) + _masked_mean(b, z_index)
    )(r1, r2)
    return jnp.mean(per_batch)


if __name__ == "__main__":
    key = jax.random.PRNGKey(0)
    kx, ky = jax.random.split(key)
    B, N, M = 2, 200, 320
    x = jax.random.normal(kx, (B, N, 3), dtype=jnp.float32)
    y = jax.random.normal(ky, (B, M, 3), dtype=jnp.float32)

    r1, r2 = _reference_dists(x, y)

    # Small tiles: exercises multi-tile accumulation in both axes, the 2-way
    # split (d2 partial combine), remainder padding, the per-strip colmin
    # folds and the lane-dense d1 running min.
    d1, d2 = jax.block_until_ready(pairwise_min_dists(x, y, tn=128, tm=128))
    assert jnp.allclose(d1, r1, rtol=1e-5, atol=1e-5), "d1 mismatch (tiled)"
    assert jnp.allclose(d2, r2, rtol=1e-5, atol=1e-5), "d2 mismatch (tiled)"

    # Default (generation-aware) config: single-tile-per-axis boundary path.
    d1b, d2b = jax.block_until_ready(pairwise_min_dists(x, y))
    assert jnp.allclose(d1b, r1, rtol=1e-5, atol=1e-5), "d1 mismatch (default)"
    assert jnp.allclose(d2b, r2, rtol=1e-5, atol=1e-5), "d2 mismatch (default)"

    loss = jax.block_until_ready(
        max_chamfer_distance(x, y, z_index=0.5, tn=128, tm=128))
    ref_loss = jax.block_until_ready(_reference_loss(x, y, z_index=0.5))
    assert jnp.allclose(loss, ref_loss, rtol=1e-3, atol=1e-4), (loss, ref_loss)

    print("KERNEL_OK")
</pallas_src>

<mosaic_0001>
module attributes {stable_mosaic.version = 11 : i64} {
  func.func @_min_dist_kernel(%arg0: i32, %arg1: i32, %arg2: i32, %arg3: i32, %arg4: memref<1x128x3xf32, #tpu.memory_space<vmem>>, %arg5: memref<1x3x128xf32, #tpu.memory_space<vmem>>, %arg6: memref<1x1x128xf32, #tpu.memory_space<vmem>>, %arg7: memref<1x1x1x128xf32, #tpu.memory_space<vmem>>, %arg8: memref<3x1x128xf32, #tpu.memory_space<vmem>>) attributes {dimension_semantics = [#tpu.dimension_semantics<parallel>, #tpu.dimension_semantics<parallel>, #tpu.dimension_semantics<arbitrary>, #tpu.dimension_semantics<arbitrary>], iteration_bounds = array<i64: 2, 2, 1, 3>, scalar_prefetch = 0 : i64, scratch_operands = 1 : i64, tpu.core_type = #tpu.core_type<tc>, window_params = [{transform_indices = @transform_0, window_bounds = array<i64: 1, 128, 3>}, {transform_indices = @transform_1, window_bounds = array<i64: 1, 3, 128>}, {transform_indices = @transform_2, window_bounds = array<i64: 1, 1, 128>}, {transform_indices = @transform_3, window_bounds = array<i64: 1, 1, 1, 128>}]} {
    %c0_i32 = arith.constant 0 : i32
    %0 = arith.cmpi eq, %arg3, %c0_i32 : i32
    %1 = arith.extui %0 : i1 to i32
    %c0_i32_0 = arith.constant 0 : i32
    %2 = arith.cmpi ne, %1, %c0_i32_0 : i32
    scf.if %2 {
      %cst_24 = arith.constant 0x7F800000 : f32
      %62 = vector.broadcast %cst_24 : f32 to vector<1x1x128xf32>
      %c0_25 = arith.constant 0 : index
      %c0_26 = arith.constant 0 : index
      %c0_27 = arith.constant 0 : index
      %63 = vector.load %arg6[%c0_25, %c0_26, %c0_27] : memref<1x1x128xf32, #tpu.memory_space<vmem>>, vector<1x1x128xf32>
      tpu.vector_store %arg6[%c0_25, %c0_26, %c0_27], %62 {strides = array<i32>} : memref<1x1x128xf32, #tpu.memory_space<vmem>>, vector<1x1x128xf32>,
    } else {
    }
    %c0_i32_1 = arith.constant 0 : i32
    %3 = arith.cmpi eq, %arg2, %c0_i32_1 : i32
    %4 = arith.extui %3 : i1 to i32
    %c0_i32_2 = arith.constant 0 : i32
    %5 = arith.cmpi ne, %4, %c0_i32_2 : i32
    scf.if %5 {
      %cst_24 = arith.constant 0x7F800000 : f32
      %62 = vector.broadcast %cst_24 : f32 to vector<1x128xf32>
      %63 = arith.index_cast %arg3 : i32 to index
      %c0_25 = arith.constant 0 : index
      %c0_26 = arith.constant 0 : index
      %64 = vector.load %arg8[%63, %c0_25, %c0_26] : memref<3x1x128xf32, #tpu.memory_space<vmem>>, vector<1x1x128xf32>
      %65 = vector.shape_cast %64 : vector<1x1x128xf32> to vector<1x128xf32>
      %66 = vector.shape_cast %62 : vector<1x128xf32> to vector<1x1x128xf32>
      tpu.vector_store %arg8[%63, %c0_25, %c0_26], %66 {strides = array<i32>} : memref<3x1x128xf32, #tpu.memory_space<vmem>>, vector<1x1x128xf32>,
    } else {
    }
    %c0 = arith.constant 0 : index
    %c0_3 = arith.constant 0 : index
    %c0_4 = arith.constant 0 : index
    %6 = vector.load %arg4[%c0, %c0_3, %c0_4] : memref<1x128x3xf32, #tpu.memory_space<vmem>>, vector<1x128x3xf32>
    %7 = vector.shape_cast %6 : vector<1x128x3xf32> to vector<128x3xf32>
    %8 = vector.extract_strided_slice %7 {offsets = [0, 0], sizes = [128, 1], strides = [1, 1]} : vector<128x3xf32> to vector<128x1xf32>
    %9 = vector.extract_strided_slice %7 {offsets = [0, 1], sizes = [128, 1], strides = [1, 1]} : vector<128x3xf32> to vector<128x1xf32>
    %10 = vector.extract_strided_slice %7 {offsets = [0, 2], sizes = [128, 1], strides = [1, 1]} : vector<128x3xf32> to vector<128x1xf32>
    %cst = arith.constant 0x7F800000 : f32
    %11 = vector.broadcast %cst : f32 to vector<128x1xf32>
    %c0_i32_5 = arith.constant 0 : i32
    %c128_i32 = arith.constant 128 : i32
    %12 = arith.muli %c0_i32_5, %c128_i32 : i32
    %13 = tpu.assume_multiple %12, 128 : i32
    %c0_6 = arith.constant 0 : index
    %c0_7 = arith.constant 0 : index
    %14 = arith.index_cast %13 : i32 to index
    %15 = vector.load %arg5[%c0_6, %c0_7, %14] : memref<1x3x128xf32, #tpu.memory_space<vmem>>, vector<1x3x128xf32>
    %16 = vector.shape_cast %15 : vector<1x3x128xf32> to vector<3x128xf32>
    %17 = vector.extract_strided_slice %16 {offsets = [0, 0], sizes = [1, 128], strides = [1, 1]} : vector<3x128xf32> to vector<1x128xf32>
    %18 = vector.broadcast %8 : vector<128x1xf32> to vector<128x128xf32>
    %19 = vector.broadcast %17 : vector<1x128xf32> to vector<128x128xf32>
    %20 = arith.subf %18, %19 : vector<128x128xf32>
    %21 = vector.extract_strided_slice %16 {offsets = [1, 0], sizes = [1, 128], strides = [1, 1]} : vector<3x128xf32> to vector<1x128xf32>
    %22 = vector.broadcast %9 : vector<128x1xf32> to vector<128x128xf32>
    %23 = vector.broadcast %21 : vector<1x128xf32> to vector<128x128xf32>
    %24 = arith.subf %22, %23 : vector<128x128xf32>
    %25 = vector.extract_strided_slice %16 {offsets = [2, 0], sizes = [1, 128], strides = [1, 1]} : vector<3x128xf32> to vector<1x128xf32>
    %26 = vector.broadcast %10 : vector<128x1xf32> to vector<128x128xf32>
    %27 = vector.broadcast %25 : vector<1x128xf32> to vector<128x128xf32>
    %28 = arith.subf %26, %27 : vector<128x128xf32>
    %29 = arith.mulf %20, %20 : vector<128x128xf32>
    %30 = arith.mulf %24, %24 : vector<128x128xf32>
    %31 = arith.addf %29, %30 : vector<128x128xf32>
    %32 = arith.mulf %28, %28 : vector<128x128xf32>
    %33 = arith.addf %31, %32 : vector<128x128xf32>
    %cst_8 = arith.constant dense<0x7F800000> : vector<128xf32>
    %34 = vector.multi_reduction <minimumf>, %33, %cst_8 [1] : vector<128x128xf32> to vector<128xf32>
    %35 = vector.shape_cast %34 : vector<128xf32> to vector<128x1xf32>
    %36 = arith.minimumf %11, %35 : vector<128x1xf32>
    %cst_9 = arith.constant dense<0x7F800000> : vector<128xf32>
    %37 = vector.multi_reduction <minimumf>, %33, %cst_9 [0] : vector<128x128xf32> to vector<128xf32>
    %38 = vector.shape_cast %37 : vector<128xf32> to vector<1x128xf32>
    %39 = arith.index_cast %arg3 : i32 to index
    %c0_10 = arith.constant 0 : index
    %40 = arith.index_cast %13 : i32 to index
    %41 = vector.load %arg8[%39, %c0_10, %40] : memref<3x1x128xf32, #tpu.memory_space<vmem>>, vector<1x1x128xf32>
    %42 = vector.shape_cast %41 : vector<1x1x128xf32> to vector<1x128xf32>
    %43 = arith.minimumf %42, %38 : vector<1x128xf32>
    %44 = arith.index_cast %arg3 : i32 to index
    %c0_11 = arith.constant 0 : index
    %45 = arith.index_cast %13 : i32 to index
    %46 = vector.load %arg8[%44, %c0_11, %45] : memref<3x1x128xf32, #tpu.memory_space<vmem>>, vector<1x1x128xf32>
    %47 = vector.shape_cast %46 : vector<1x1x128xf32> to vector<1x128xf32>
    %48 = vector.shape_cast %43 : vector<1x128xf32> to vector<1x1x128xf32>
    tpu.vector_store %arg8[%44, %c0_11, %45], %48 {strides = array<i32>} : memref<3x1x128xf32, #tpu.memory_space<vmem>>, vector<1x1x128xf32>,
    %c1_i32 = arith.constant 1 : i32
    %c0_12 = arith.constant 0 : index
    %c0_13 = arith.constant 0 : index
    %c0_14 = arith.constant 0 : index
    %49 = vector.load %arg6[%c0_12, %c0_13, %c0_14] : memref<1x1x128xf32, #tpu.memory_space<vmem>>, vector<1x1x128xf32>
    %50 = vector.shape_cast %49 : vector<1x1x128xf32> to vector<128xf32>
    %51 = vector.shape_cast %36 : vector<128x1xf32> to vector<128xf32>
    %52 = arith.minimumf %50, %51 : vector<128xf32>
    %c0_15 = arith.constant 0 : index
    %c0_16 = arith.constant 0 : index
    %c0_17 = arith.constant 0 : index
    %53 = vector.load %arg6[%c0_15, %c0_16, %c0_17] : memref<1x1x128xf32, #tpu.memory_space<vmem>>, vector<1x1x128xf32>
    %54 = vector.shape_cast %53 : vector<1x1x128xf32> to vector<128xf32>
    %55 = vector.shape_cast %52 : vector<128xf32> to vector<1x1x128xf32>
    tpu.vector_store %arg6[%c0_15, %c0_16, %c0_17], %55 {strides = array<i32>} : memref<1x1x128xf32, #tpu.memory_space<vmem>>, vector<1x1x128xf32>,
    %56 = arith.index_cast %arg3 : i32 to index
    %c0_18 = arith.constant 0 : index
    %c0_19 = arith.constant 0 : index
    %57 = vector.load %arg8[%56, %c0_18, %c0_19] : memref<3x1x128xf32, #tpu.memory_space<vmem>>, vector<1x1x128xf32>
    %58 = vector.shape_cast %57 : vector<1x1x128xf32> to vector<1x128xf32>
    %c0_20 = arith.constant 0 : index
    %c0_21 = arith.constant 0 : index
    %c0_22 = arith.constant 0 : index
    %c0_23 = arith.constant 0 : index
    %59 = vector.load %arg7[%c0_20, %c0_21, %c0_22, %c0_23] : memref<1x1x1x128xf32, #tpu.memory_space<vmem>>, vector<1x1x1x128xf32>
    %60 = vector.shape_cast %59 : vector<1x1x1x128xf32> to vector<1x128xf32>
    %61 = vector.shape_cast %58 : vector<1x128xf32> to vector<1x1x1x128xf32>
    tpu.vector_store %arg7[%c0_20, %c0_21, %c0_22, %c0_23], %61 {strides = array<i32>} : memref<1x1x1x128xf32, #tpu.memory_space<vmem>>, vector<1x1x1x128xf32>,
    return
  }
  func.func @transform_0(%arg0: i32, %arg1: i32, %arg2: i32, %arg3: i32) -> (i32, i32, i32) {
    %c1_i32 = arith.constant 1 : i32
    %0 = arith.muli %arg1, %c1_i32 : i32
    %1 = arith.addi %0, %arg2 : i32
    %c0_i32 = arith.constant 0 : i32
    %c0_i32_0 = arith.constant 0 : i32
    return %arg0, %1, %c0_i32 : i32, i32, i32
  }
  func.func @transform_1(%arg0: i32, %arg1: i32, %arg2: i32, %arg3: i32) -> (i32, i32, i32) {
    %c0_i32 = arith.constant 0 : i32
    %c0_i32_0 = arith.constant 0 : i32
    return %arg0, %c0_i32, %arg3 : i32, i32, i32
  }
  func.func @transform_2(%arg0: i32, %arg1: i32, %arg2: i32, %arg3: i32) -> (i32, i32, i32) {
    %c1_i32 = arith.constant 1 : i32
    %0 = arith.muli %arg1, %c1_i32 : i32
    %1 = arith.addi %0, %arg2 : i32
    %c0_i32 = arith.constant 0 : i32
    %c0_i32_0 = arith.constant 0 : i32
    return %arg0, %c0_i32, %1 : i32, i32, i32
  }
  func.func @transform_3(%arg0: i32, %arg1: i32, %arg2: i32, %arg3: i32) -> (i32, i32, i32, i32) {
    %c0_i32 = arith.constant 0 : i32
    %c0_i32_0 = arith.constant 0 : i32
    return %arg1, %arg0, %c0_i32, %arg3 : i32, i32, i32, i32
  }
}

</mosaic_0001>

<bundles_post_ra>
// kernel: tpu_custom_call.1
= control target key start
LH: loop header
LB: loop body
LE: loop exit
PB: predicated region body
PF: predicated region fallthrough
CT: control target
= control target key end

     0   :  { %s3778_s0 = inlined_call_operand.hbm [shape: f32[2,256,3], index: 0, kind: input, shape index: {}]   ;;  %s3779_s1 = inlined_call_operand.hbm [shape: f32[2,3,384], index: 1, kind: input, shape index: {}]   ;;  %s3780_s2 = inlined_call_operand.hbm [shape: f32[2,1,256], index: 2, kind: output, shape index: {0}]   ;;  %s3781_s3 = inlined_call_operand.hbm [shape: f32[2,2,1,384], index: 3, kind: output, shape index: {1}]  }
   0x1   :  { %3802 = sst [smem:[#allocation26_spill]] %s3778_s0 }
   0x2   :  { %3803 = sst [smem:[#allocation27_spill]] %s3779_s1 }
   0x3   :  { %3804 = sst [smem:[#allocation28_spill]] %s3780_s2 }
   0x4   :  { %3805 = sst [smem:[#allocation29_spill]] %s3781_s3 }
   0x5   :  { %9 = vsyncpa [#allocation4], 0 }
   0x6   :  { %11 = vsyncpa [#allocation4 + $0x1], 0 }
   0x7   :  { %12 = vsyncpa [#allocation7], 0 }
   0x8   :  { %14 = vsyncpa [#allocation7 + $0x1], 0 }
   0x9   :  { %15 = vsyncpa [#allocation5], 0 }
   0xa   :  { %17 = vsyncpa [#allocation5 + $0x1], 0 }
   0xb   :  { %18 = vsyncpa [#allocation10], 0 }
   0xc   :  { %20 = vsyncpa [#allocation10 + $0x1], 0  ;;  %s2891_s12 = smov 0   ;;  %s2893_s13 = smov 0  }
   0xd   :  { %s2895_s14 = smov 0   ;;  %s2897_s15 = smov 0  }
   0xe   :  { %s2899_s16 = smov 0   ;;  %s2901_s17 = smov 0  }
   0xf   :  { %s2903_s18 = smov 0   ;;  %s2905_s19 = smov 0  }
  0x10   :  { %s2907_s20 = smov 0   ;;  %s2909_s21 = smov 0  }
  0x11   :  { %s2911_s22 = smov 0   ;;  %s2913_s23 = smov 0  }
  0x12   :  { %s2915_s24 = smov 0   ;;  %s2917_s25 = smov 0  }
  0x13   :  { %s2919_s26 = smov 0   ;;  %s2921_s27 = smov 0  }
  0x14 LB: > { %3806 = sst [smem:[#allocation15_spill]] %s2797_s12  ;;  %s2400_s28 = sadd.s32 4294967294, %s2857_s27   ;;  %s2857_s27 = sphi %s2921_s27, %s26_s27   ;;  %s2853_s26 = sphi %s2919_s26, %s3856_s26   ;;  %s2849_s25 = sphi %s2917_s25, %s3855_s25   ;;  %s2845_s24 = sphi %s2915_s24, %s3868_s24   ;;  %s2841_s23 = sphi %s2913_s23, %s3853_s23   ;;  %s2837_s22 = sphi %s2911_s22, %s3852_s22   ;;  %s2833_s21 = sphi %s2909_s21, %s3867_s21   ;;  %s2829_s20 = sphi %s2907_s20, %s3866_s20   ;;  %s2825_s19 = sphi %s2905_s19, %s3865_s19   ;;  %s2821_s18 = sphi %s2903_s18, %s3864_s18   ;;  %s2817_s17 = sphi %s2901_s17, %s3863_s17   ;;  %s2813_s16 = sphi %s2899_s16, %s3862_s16   ;;  %s2809_s15 = sphi %s2897_s15, %s3861_s15   ;;  %s2805_s14 = sphi %s2895_s14, %s3860_s14   ;;  %s2801_s13 = sphi %s2893_s13, %s3859_s13   ;;  %s2797_s12 = sphi %s2891_s12, %s3857_s12  }
  0x15   : > { %3807 = sst [smem:[#allocation16_spill]] %s2821_s18  ;;  %p3788_p0 = scmp.ne.s32.totalorder %s2829_s20, %s2825_s19 }
  0x16   : > { %3808 = sst [smem:[#allocation17_spill]] %s2829_s20  ;;  %p3787_p1 = scmp.eq.s32.totalorder %s2857_s27, 0 }
  0x17   : > { %3809 = sst [smem:[#allocation18_spill]] %s2837_s22  ;;  %p3789_p2 = scmp.ne.s32.totalorder %s2825_s19, %s2821_s18 }
  0x18   : > { %3810 = sst [smem:[#allocation19_spill]] %s2849_s25  ;;  %p2977_p3 = scmp.eq.s32.totalorder %s2400_s28, 11 }
  0x19   : > { %3811 = sst [smem:[#allocation20_spill]] %s2853_s26  ;;  %p2986_p4 = por %p3787_p1, %p3788_p0 }
  0x1a   : > { %p2995_p5 = por %p2977_p3, %p3789_p2  ;;  %p3786_p6 = scmp.lt.s32.totalorder %s2857_s27, 12 }
  0x1b   : > { %s188_s5 = sand.u32 1, %s2829_s20   ;;  %s2404_s6 = sshll.u32 %s2849_s25, 4 }
  0x1c   : > { %s3814_s4 = scalar_select %p2995_p5, 1, 0 }
  0x1d   : > { %s2403_s7 = sshll.u32 %s188_s5, 7  ;;  %s2405_s8 = sshll.u32 %s2853_s26, 5 }
  0x1e   : > { %3815 = sst [smem:[#allocation21_spill]] %s3814_s4  ;;  %s199_s9 = sadd.s32 %s2405_s8, %s2404_s6 }
  0x1f   : > { %s192_s10 = scalar_lea.vmem [#allocation3], %s2403_s7  ;;  %s2406_s28 = sshll.u32 %s199_s9, 7 }
  0x20   : > { %s202_s11 = sshll.u32 %s192_s10, 4  ;;  %s3816_s0 = sld [smem:[#allocation26_spill]]  ;;  %s3003_s11 = int_to_ptr.vmem [resolvable:$true] %s202_s11 }
  0x21   : > { %p3014_p7 = pnand %p3786_p6, %p2986_p4  ;;  %s3019_s6 = scalar_lea.sflag [#allocation4], %s188_s5 }
  0x23   : > { %p2601_p10 = pneg %p3014_p7 }
  0x26   : > { %s3008_s22 = scalar_lea.hbm %s3816_s0, %s2406_s28  ;;  %s2604_s30 = scalar_lea.hbm %s3816_s0, 8192 }
  0x27   : > { %s2599_s7 = scalar_lea.hbm %s3008_s22, 2048  ;;  %p2605_p13 = scmp.lt.u32.totalorder %s3008_s22, %s3816_s0 }
  0x28   : > { %p2600_p9 = scmp.ne.s32.totalorder %s3008_s22, %s2599_s7  ;;  %p2606_p4 = scmp.lt.u32.totalorder %s2604_s30, %s2599_s7 }
  0x29   : > { %p2608_p1 = scmp.lt.u32.totalorder %s2599_s7, %s3008_s22 }
  0x2a   : > { %p2602_p11 = pnand %p2601_p10, %p2600_p9  ;;  %p2607_p6 = por %p2606_p4, %p2605_p13 }
  0x2c   : > { %p2603_p12 = pneg %p2602_p11  ;;  %p2609_p0 = por %p2608_p1, %p2607_p6 }
  0x2e   : > { %p2610_p2 = pnand %p2609_p0, %p2603_p12 }
  0x30   : > { %2613 = shalt.err (!%p2610_p2)
}
  0x31   : > { %s2614_s5 = scalar_lea.vmem %s3003_s11, 2048  ;;  %s2859_s10 = smov [#allocation3]  }
  0x32   : > { %p2615_p9 = scmp.ne.s32.totalorder %s3003_s11, %s2614_s5  ;;  %s2619_s28 = sshll.u32 %s2859_s10, 4  ;;  %s2620_s28 = int_to_ptr.vmem [resolvable:$false] %s2619_s28 }
  0x33   : > { %s2621_s2 = scalar_lea.vmem %s2620_s28, 4096  ;;  %p2622_p5 = scmp.lt.s32.totalorder %s3003_s11, %s2620_s28 }
  0x34   : > { %p2617_p11 = pnand %p2615_p9, %p2601_p10  ;;  %p2623_p13 = scmp.lt.s32.totalorder %s2621_s2, %s2614_s5 }
  0x36   : > { %p2618_p8 = pneg %p2617_p11  ;;  %p2624_p4 = por %p2623_p13, %p2622_p5 }
  0x38   : > { %p2625_p1 = pnand %p2624_p4, %p2618_p8 }
  0x3a   : > { %2628 = shalt.err (!%p2625_p1)
}
  0x3b   : > { %s2860_s7 = smov 128   ;;  %s2861_s3 = smov 8  }
  0x3c   : > { %2432 = dma.hbm_to_vmem [thread:$0]  (!%p3014_p7), %s3008_s22, 2048, %s3003_s11, %s3019_s6, %s2860_s7, %s2860_s7, %s2861_s3  }
  0x3d   : > { %p230_p0 = scmp.lt.s32.totalorder %s2857_s27, 13  ;;  %p3818_p2 = scmp.ge.s32.totalorder %s2857_s27, 1 }
  0x3e   : > { %s2399_s9 = sadd.s32 4294967295, %s2857_s27   ;;  %s41_s5 = sadd.s32 1, %s2845_s24 }
  0x3f   : > { %p3051_p5 = pnand %p3818_p2, %p230_p0  ;;  %p42_p6 = scmp.ge.s32.totalorder %s41_s5, 3 }
  0x40   : > { %s48_s10 = sadd.s32 1, %s2849_s25  ;;  %p3058_p8 = scmp.eq.s32.totalorder %s2399_s9, 0 }
  0x41   : > { %s3870_s5 = smov (%p42_p6, %s41_s5), 0  ;;  %s3872_s10 = smov (!%p42_p6, %s48_s10), %s2849_s25 }
  0x42   : > { %3821 = sst [smem:[#allocation22_spill]] %s3870_s5  ;;  %s52_s22 = sadd.s32 1, %s2853_s26 }
  0x43   : > { %p3822_p7 = scmp.ne.s32.totalorder %s2825_s19, %s2821_s18  ;;  %p50_p12 = scmp.ge.s32.totalorder %s3872_s10, 2 }
  0x44   : > { %s87_s6 = ssub.s32 %s2845_s24, %s3870_s5  ;;  %s91_s28 = sadd.s32 1, %s2817_s17 }
  0x45   : > { %p3071_p10 = por %p3058_p8, %p3822_p7  ;;  %p104_p9 = scmp.ne.s32.totalorder %s2813_s16, %s2809_s15 }
  0x46   : > { %s3874_s10 = smov (%p50_p12, %s3872_s10), 0  ;;  %s3876_s22 = smov (!%p50_p12, %s52_s22), %s2853_s26 }
  0x47   : > { %s3823_s11 = scalar_select %p3071_p10, 1, 0 }
  0x48   : > { %3824 = sst [smem:[#allocation23_spill]] %s3874_s10  ;;  %s59_s2 = ssub.s32 %s2849_s25, %s3874_s10 }
  0x49   : > { %p98_p11 = scmp.ne.s32.totalorder %s2817_s17, %s2813_s16  ;;  %p54_p13 = scmp.ge.s32.totalorder %s3876_s22, 2 }
  0x4a   : > { %p3089_p4 = por %p104_p9, %p3058_p8  ;;  %p132_p1 = scmp.eq.s32.totalorder %s2399_s9, 11 }
  0x4b   : > { %s151_s3 = sadd.s32 1, %s2805_s14  ;;  %s3878_s22 = smov (%p54_p13, %s3876_s22), 0 }
  0x4c   : > { %s3825_s7 = scalar_select %p3089_p4, 1, 0 }
  0x4d   : > { %3826 = sst [smem:[#allocation24_spill]] %s3878_s22  ;;  %p3827_p0 = scmp.ne.s32.totalorder %s2829_s20, %s2825_s19 }
  0x4e   : > { %p161_p6 = scmp.ne.s32.totalorder %s2805_s14, %s2801_s13  ;;  %s58_s4 = ssub.s32 %s2853_s26, %s3878_s22 }
  0x4f   : > { %p3099_p2 = por %p132_p1, %p3827_p0  ;;  %p167_p8 = scmp.ne.s32.totalorder %s2801_s13, %s2797_s12 }
  0x50   : > { %s60_s9 = sor.u32 %s59_s2, %s58_s4  ;;  %s88_s30 = sor.u32 %s87_s6, %s58_s4 }
  0x51   : > { %s3828_s15 = scalar_select %p3099_p2, 1, 0 }
  0x52   : > { %p61_p7 = scmp.eq.s32.totalorder %s60_s9, 0  ;;  %p89_p12 = scmp.eq.s32.totalorder %s88_s30, 0 }
  0x53   : > { %s148_s0 = sor.u32 %s87_s6, %s60_s9  ;;  %p3109_p9 = por %p161_p6, %p132_p1 }
  0x54   : > { %s3830_s5 = sadd.s32 1, %s2829_s20  ;;  %p149_p13 = scmp.eq.s32.totalorder %s148_s0, 0 }
  0x55   : > { %s3829_s10 = scalar_select %p3109_p9, 1, 0 }
  0x56   : > { %s3116_s25 = scalar_select %p61_p7, %s2829_s20, %s3830_s5  }
  0x57   : > { %s3119_s18 = scalar_select %p89_p12, %s2817_s17, %s91_s28  }
  0x58   : > { %3831 = sst [smem:[#allocation25_spill]] %s3116_s25  ;;  %p3123_p0 = por %p167_p8, %p2977_p3 }
  0x59   : > { %s212_s2 = sand.u32 1, %s2817_s17   ;;  %s2418_s4 = smul.u32 3, %s2853_s26 }
  0x5a   : > { %s3832_s22 = scalar_select %p3123_p0, 1, 0 }
  0x5b   : > { %s3130_s30 = scalar_select %p149_p13, %s2805_s14, %s151_s3  }
  0x5c   : > { %p3833_p1 = scmp.eq.s32.totalorder %s2857_s27, 0  ;;  %s2407_s6 = sshll.u32 %s212_s2, 2 }
  0x5d   : > { %s221_s9 = sadd.s32 %s2845_s24, %s2418_s4  ;;  %s216_s5 = scalar_lea.vmem [#allocation6], %s2407_s6 }
  0x5e   : > { %p100_p6 = por %p98_p11, %p3833_p1  ;;  %s2408_s12 = sshll.u32 %s221_s9, 6 }
  0x5f   : > { %s225_s25 = sshll.u32 %s216_s5, 4  ;;  %s3834_s1 = sld [smem:[#allocation27_spill]]  ;;  %s3143_s25 = int_to_ptr.vmem [resolvable:$true] %s225_s25 }
  0x60   : > { %p3835_p3 = scmp.lt.s32.totalorder %s2857_s27, 12  ;;  %s213_s3 = scalar_lea.sflag [#allocation7], %s212_s2 }
  0x62   : > { %p3147_p8 = pnand %p3835_p3, %p100_p6 }
  0x64   : > { %p2631_p7 = pneg %p3147_p8 }
  0x65   : > { %s3141_s0 = scalar_lea.hbm %s3834_s1, %s2408_s12  ;;  %s2634_s6 = scalar_lea.hbm %s3834_s1, 384 }
  0x66   : > { %s2629_s4 = scalar_lea.hbm %s3141_s0, 64  ;;  %p2635_p1 = scmp.lt.u32.totalorder %s3141_s0, %s3834_s1 }
  0x67   : > { %p2630_p11 = scmp.ne.s32.totalorder %s3141_s0, %s2629_s4  ;;  %p2636_p6 = scmp.lt.u32.totalorder %s2634_s6, %s2629_s4 }
  0x68   : > { %p2638_p0 = scmp.lt.u32.totalorder %s2629_s4, %s3141_s0 }
  0x69   : > { %p2632_p12 = pnand %p2631_p7, %p2630_p11  ;;  %p2637_p3 = por %p2636_p6, %p2635_p1 }
  0x6b   : > { %p2633_p13 = pneg %p2632_p12  ;;  %p2639_p2 = por %p2638_p0, %p2637_p3 }
  0x6d   : > { %p2640_p9 = pnand %p2639_p2, %p2633_p13 }
  0x6f   : > { %2643 = shalt.err (!%p2640_p9)
}
  0x70   : > { %s2644_s2 = scalar_lea.vmem %s3143_s25, 64  ;;  %s2862_s28 = smov [#allocation6]  }
  0x71   : > { %p2645_p11 = scmp.ne.s32.totalorder %s3143_s25, %s2644_s2  ;;  %s2649_s12 = sshll.u32 %s2862_s28, 4  ;;  %s2650_s12 = int_to_ptr.vmem [resolvable:$false] %s2649_s12 }
  0x72   : > { %s2651_s20 = scalar_lea.vmem %s2650_s12, 128  ;;  %p2652_p10 = scmp.lt.s32.totalorder %s3143_s25, %s2650_s12 }
  0x73   : > { %p2647_p12 = pnand %p2645_p11, %p2631_p7  ;;  %p2653_p1 = scmp.lt.s32.totalorder %s2651_s20, %s2644_s2 }
  0x75   : > { %p2648_p4 = pneg %p2647_p12  ;;  %p2654_p6 = por %p2653_p1, %p2652_p10 }
  0x77   : > { %p2655_p0 = pnand %p2654_p6, %p2648_p4 }
  0x79   : > { %2658 = shalt.err (!%p2655_p0)
}
  0x7a   : > { %2435 = dma.hbm_to_vmem [thread:$0]  (!%p3147_p8), %s3141_s0, 64, %s3143_s25, %s213_s3  }
  0x7b   : > { %234 = sbr.rel (%p3051_p5) target bundleno = 715 (0x2cb), region = 28  ;;  %s3179_s4 = sand.u32 (!%p3051_p5), 1, %s2825_s19  }
  0x7c   : > { %s2410_s6 = sshll.u32 (!%p3051_p5), %s3179_s4, 7  ;;  %s237_s9 = scalar_lea.sflag (!%p3051_p5), [#allocation4], %s3179_s4 }
  0x7d   : > { %s3183_s5 = scalar_lea.vmem (!%p3051_p5), [#allocation3], %s2410_s6  ;;  %p3837_p10 = scmp.ne.s32.totalorder (!%p3051_p5), %s3823_s11, 0 }
  0x82   : > { %2780 = dma.done.wait (%p3837_p10), %s237_s9, 2048  }
  0x83   : > { %2782 = vsyncadd (%p3837_p10), %s237_s9, 4294965248  ;;  %s245_s25 = sand.u32 1, %s2813_s16   ;;  %p3838_p5 = scmp.ne.s32.totalorder %s3825_s7, 0 }
  0x84   : > { %s3190_s8 = sshll.u32 %s245_s25, 2  ;;  %s246_s0 = scalar_lea.sflag [#allocation7], %s245_s25 }
  0x85   : > { %s249_s29 = scalar_lea.vmem [#allocation6], %s3190_s8 }
  0x86   : > { %2784 = dma.done.wait (%p3838_p5), %s246_s0, 64  }
  0x87   : > { %2786 = vsyncadd (%p3838_p5), %s246_s0, 4294967232  ;;  %s278_s3 = sand.u32 1, %s2801_s13   ;;  %s3199_s2 = scalar_lea.vmem [#allocation8], %s3179_s4 }
  0x88   : > { %s3203_s11 = scalar_lea.vmem [#allocation9], %s278_s3  ;;  %p2412_p4 = scmp.ne.s32.totalorder %s2833_s21, 0 }
  0x89   : > { %v2863_v0 = vmov (!%p2412_p4), inf  }
  0x8a   : > { %286 = sbr.rel (%p2412_p4) target bundleno = 145 (0x91), region = 40  ;;  %287 = vst [vmem:[%s3199_s2] sm:$0x1] (!%p2412_p4), %v2863_v0 }
  0x91 PF: > { %v296_v1 = vld [vmem:[%s3183_s5 + $0x10] sm:$0xff]  ;;  %v294_v2 = vld [vmem:[%s3183_s5] sm:$0xff]  ;;  %v2864_v3 = vmov 0   ;;  %v297_v4 = vld [vmem:[%s3183_s5 + $0x18] sm:$0xff]  ;;  %v2865_v18 = vmov 1   ;;  %v2866_v19 = vmov 2   ;;  %v391_v24 = vlaneseq }
  0x92   : > { %2582 = vset.pattern.permute.xlu1 %v2864_v3  ;;  %2581 = vset.pattern.permute.xlu0 %v2864_v3  ;;  %v295_v5 = vld [vmem:[%s3183_s5 + $0x8] sm:$0xff]  ;;  %v298_v7 = vld [vmem:[%s3183_s5 + $0x20] sm:$0xff]  ;;  %v301_v8 = vld [vmem:[%s3183_s5 + $0x38] sm:$0xff]  ;;  %s3256_s7 = scalar_lea.vmem [#allocation2], %s2833_s21  ;;  %v2867_v40 = vmov inf   ;;  %s3839_s28 = sld [smem:[#allocation18_spill]] }
  0x93   : > { %323 = vperm.xlu1 %2582, %v296_v1   ;;  %313 = vperm.xlu0 %2581, %v294_v2   ;;  %v299_v6 = vld [vmem:[%s3183_s5 + $0x28] sm:$0xff]  ;;  %v300_v9 = vld [vmem:[%s3183_s5 + $0x30] sm:$0xff]  ;;  %v302_v11 = vld [vmem:[%s3183_s5 + $0x40] sm:$0xff]  ;;  %v3232_v27 = vshrl.u32 %v391_v24, 7  ;;  %293 = vst [vmem:[%s3256_s7] sm:$0x1] %v2867_v40  ;;  %s2419_s12 = smul.u32 3, %s2841_s23 }
  0x94   : > { %v303_v10 = vld [vmem:[%s3183_s5 + $0x48] sm:$0xff]  ;;  %v305_v12 = vld [vmem:[%s3183_s5 + $0x58] sm:$0xff]  ;;  %v304_v13 = vld [vmem:[%s3183_s5 + $0x50] sm:$0xff]  ;;  %s2246_s20 = sshll.u32 %s3203_s11, 4  ;;  %s2214_s1 = scalar_lea.sflag [#allocation10], %s278_s3  ;;  %s3621_s20 = int_to_ptr.vmem [resolvable:$true] %s2246_s20 }
  0x95   : > { %v307_v14 = vld [vmem:[%s3183_s5 + $0x68] sm:$0xff]  ;;  %v306_v15 = vld [vmem:[%s3183_s5 + $0x60] sm:$0xff]  ;;  %v309_v16 = vld [vmem:[%s3183_s5 + $0x78] sm:$0xff]  ;;  %v3239_v30 = vsub.s32 0, %v3232_v27  ;;  %v3270_v47 = vsub.s32 1, %v3232_v27  ;;  %v3276_v51 = vsub.s32 2, %v3232_v27  ;;  %s2240_s9 = sadd.s32 %s2833_s21, %s2419_s12 }
  0x96   : > { %v308_v17 = vld [vmem:[%s3183_s5 + $0x70] sm:$0xff]  ;;  %v310_v31 = vld [vmem:[%s249_s29] sm:$0x7]  ;;  %s3840_s29 = sld [smem:[#allocation29_spill]]  ;;  %s2659_s26 = scalar_lea.vmem %s3621_s20, 16 }
  0x97   : > { %328 = vperm.xlu1 %2582, %v297_v4   ;;  %318 = vperm.xlu0 %2581, %v295_v5   ;;  %v3248_v34 = vrot.slane %v310_v31, %v3239_v30  ;;  %v3273_v48 = vrot.slane %v310_v31, %v3270_v47  ;;  %v3281_v56 = vrot.slane %v310_v31, %v3276_v51  ;;  %p2660_p2 = scmp.ne.s32.totalorder %s3621_s20, %s2659_s26  ;;  %p3841_p9 = scmp.ne.s32.totalorder %s3829_s10, 0 }
  0x98   : > { %s2420_s6 = smul.u32 6, %s3839_s28 }
  0x99   : > { %p2661_p8 = pnand %p2660_p2, %p3841_p9 }
  0x9a   : > { %s2242_s5 = sadd.s32 %s2420_s6, %s2240_s9 }
  0x9b   : > { %338 = vperm.xlu1 %2582, %v299_v6   ;;  %333 = vperm.xlu0 %2581, %v298_v7   ;;  %s2415_s25 = sshll.u32 %s2242_s5, 4  ;;  %p2662_p7 = pneg %p2661_p8 }
  0x9f   : > { %348 = vperm.xlu1 %2582, %v301_v8   ;;  %343 = vperm.xlu0 %2581, %v300_v9  }
  0xa3   : > { %358 = vperm.xlu1 %2582, %v303_v10   ;;  %353 = vperm.xlu0 %2581, %v302_v11  }
  0xa7   : > { %368 = vperm.xlu1 %2582, %v305_v12   ;;  %363 = vperm.xlu0 %2581, %v304_v13  }
  0xab   : > { %378 = vperm.xlu1 %2582, %v307_v14   ;;  %373 = vperm.xlu0 %2581, %v306_v15  }
  0xaf   : > { %388 = vperm.xlu1 %2582, %v309_v16   ;;  %383 = vperm.xlu0 %2581, %v308_v17  }
  0xb3   : > { %2584 = vset.pattern.permute.xlu1 %v2865_v18  ;;  %2583 = vset.pattern.permute.xlu0 %v2865_v18 }
  0xb4   : > { %416 = vperm.xlu1 %2584, %v295_v5   ;;  %412 = vperm.xlu0 %2583, %v294_v2  }
  0xb8   : > { %420 = vperm.xlu1 %2584, %v296_v1   ;;  %424 = vperm.xlu0 %2583, %v297_v4  }
  0xbc   : > { %2585 = vset.pattern.permute.xlu1 %v2866_v19  ;;  %432 = vperm.xlu0 %2583, %v299_v6  }
  0xbd   : > { %496 = vperm.xlu1 %2585, %v294_v2  }
  0xc0   : > { %444 = vperm.xlu0 %2583, %v302_v11  }
  0xc1   : > { %2586 = vset.pattern.permute.xlu1 %v2865_v18 }
  0xc2   : > { %428 = vperm.xlu1 %2586, %v298_v7  }
  0xc4   : > { %456 = vperm.xlu0 %2583, %v305_v12  }
  0xc6   : > { %2587 = vset.pattern.permute.xlu1 %v2866_v19 }
  0xc7   : > { %504 = vperm.xlu1 %2587, %v296_v1  }
  0xc8   : > { %468 = vperm.xlu0 %2583, %v308_v17  }
  0xcb   : > { %508 = vperm.xlu1 %2587, %v297_v4  }
  0xcc   : > { %2594 = vset.pattern.permute.xlu0 %v2866_v19 }
  0xcd   : > { %500 = vperm.xlu0 %2594, %v295_v5  }
  0xcf   : > { %2588 = vset.pattern.permute.xlu1 %v2865_v18 }
  0xd0   : > { %436 = vperm.xlu1 %2588, %v300_v9  }
  0xd1   : > { %512 = vperm.xlu0 %2594, %v298_v7  }
  0xd4   : > { %440 = vperm.xlu1 %2588, %v301_v8  }
  0xd5   : > { %524 = vperm.xlu0 %2594, %v301_v8  }
  0xd8   : > { %2589 = vset.pattern.permute.xlu1 %v2866_v19 }
  0xd9   : > { %516 = vperm.xlu1 %2589, %v299_v6   ;;  %536 = vperm.xlu0 %2594, %v304_v13  }
  0xdd   : > { %520 = vperm.xlu1 %2589, %v300_v9   ;;  %548 = vperm.xlu0 %2594, %v307_v14  }
  0xe1   : > { %2590 = vset.pattern.permute.xlu1 %v2865_v18  ;;  %2598 = vset.pattern.permute.xlu0 %v2864_v3 }
  0xe2   : > { %448 = vperm.xlu1 %2590, %v303_v10  }
  0xe6   : > { %452 = vperm.xlu1 %2590, %v304_v13  }
  0xea   : > { %2591 = vset.pattern.permute.xlu1 %v2866_v19 }
  0xeb   : > { %528 = vperm.xlu1 %2591, %v302_v11  }
  0xef   : > { %532 = vperm.xlu1 %2591, %v303_v10  }
  0xf3   : > { %2592 = vset.pattern.permute.xlu1 %v2865_v18 }
  0xf4   : > { %460 = vperm.xlu1 %2592, %v306_v15  }
  0xf8   : > { %464 = vperm.xlu1 %2592, %v307_v14  }
  0xfc   : > { %2593 = vset.pattern.permute.xlu1 %v2866_v19 }
  0xfd   : > { %540 = vperm.xlu1 %2593, %v305_v12  }
 0x101   : > { %544 = vperm.xlu1 %2593, %v306_v15  }
 0x105   : > { %2595 = vset.pattern.permute.xlu1 %v2865_v18 }
 0x106   : > { %472 = vperm.xlu1 %2595, %v309_v16  }
 0x10a   : > { %2596 = vset.pattern.permute.xlu1 %v2866_v19 }
 0x10b   : > { %552 = vperm.xlu1 %2596, %v308_v17  }
 0x10f   : > { %556 = vperm.xlu1 %2596, %v309_v16  }
 0x112   : > { %v324_v20 = vpop.permute.xlu1 %323  ;;  %v314_v21 = vpop.permute.xlu0 %313 }
 0x113   : > { %2597 = vset.pattern.permute.xlu1 %v2864_v3  ;;  %v395_v55 = vsub.f32 %v314_v21, %v3248_v34  ;;  %v397_v4 = vsub.f32 %v324_v20, %v3248_v34 }
 0x115   : > { %v579_v60 = vmul.f32 %v395_v55, %v395_v55  ;;  %v581_v10 = vmul.f32 %v397_v4, %v397_v4 }
 0x116   : > { %v329_v22 = vpop.permute.xlu1 %328  ;;  %v319_v23 = vpop.permute.xlu0 %318 }
 0x117   : > { %v398_v8 = vsub.f32 %v329_v22, %v3248_v34  ;;  %v396_v14 = vsub.f32 %v319_v23, %v3248_v34 }
 0x119   : > { %v582_v19 = vmul.f32 %v398_v8, %v398_v8  ;;  %v580_v40 = vmul.f32 %v396_v14, %v396_v14 }
 0x11a   : > { %v3227_v25 = vpop.permute.xlu1 %338  ;;  %v3229_v26 = vpop.permute.xlu0 %333 }
 0x11b   : > { %v400_v4 = vsub.f32 %v3227_v25, %v3248_v34 }
 0x11e   : > { %v3234_v28 = vpop.permute.xlu1 %348  ;;  %v3236_v29 = vpop.permute.xlu0 %343 }
 0x122   : > { %v3243_v32 = vpop.permute.xlu1 %358  ;;  %v3245_v33 = vpop.permute.xlu0 %353 }
 0x126   : > { %v369_v35 = vpop.permute.xlu1 %368  ;;  %v3250_v36 = vpop.permute.xlu0 %363 }
 0x127   : > { %v3253_v37 = vsub.f32 %v369_v35, %v3248_v34 }
 0x12a   : > { %v379_v38 = vpop.permute.xlu1 %378  ;;  %v374_v39 = vpop.permute.xlu0 %373 }
 0x12b   : > { %v3260_v41 = vsub.f32 %v379_v38, %v3248_v34  ;;  %v3263_v42 = vsub.f32 %v374_v39, %v3248_v34 }
 0x12e   : > { %v389_v43 = vpop.permute.xlu1 %388  ;;  %v384_v44 = vpop.permute.xlu0 %383 }
 0x12f   : > { %v3266_v45 = vsub.f32 %v389_v43, %v3248_v34  ;;  %v409_v46 = vsub.f32 %v384_v44, %v3248_v34  ;;  %v399_v44 = vsub.f32 %v3229_v26, %v3248_v34 }
 0x131   : > { %v593_v20 = vmul.f32 %v409_v46, %v409_v46 }
 0x133   : > { %v417_v49 = vpop.permute.xlu1 %416  ;;  %v413_v50 = vpop.permute.xlu0 %412 }
 0x134   : > { %v479_v52 = vsub.f32 %v413_v50, %v3273_v48  ;;  %v480_v11 = vsub.f32 %v417_v49, %v3273_v48 }
 0x136   : > { %v595_v57 = vmul.f32 %v479_v52, %v479_v52  ;;  %v596_v35 = vmul.f32 %v480_v11, %v480_v11 }
 0x137   : > { %v421_v53 = vpop.permute.xlu1 %420  ;;  %v425_v54 = vpop.permute.xlu0 %424 }
 0x138   : > { %v611_v62 = vadd.f32 %v595_v57, %v579_v60  ;;  %v481_v1 = vsub.f32 %v421_v53, %v3273_v48  ;;  %v482_v7 = vsub.f32 %v425_v54, %v3273_v48  ;;  %v612_v52 = vadd.f32 %v596_v35, %v580_v40 }
 0x139   : > { %v583_v60 = vmul.f32 %v399_v44, %v399_v44 }
 0x13a   : > { %v597_v6 = vmul.f32 %v481_v1, %v481_v1  ;;  %v598_v17 = vmul.f32 %v482_v7, %v482_v7 }
 0x13b   : > { %v433_v58 = vpop.permute.xlu0 %432 }
 0x13c   : > { %v497_v59 = vpop.permute.xlu1 %496  ;;  %v613_v16 = vadd.f32 %v597_v6, %v581_v10  ;;  %v614_v49 = vadd.f32 %v598_v17, %v582_v19  ;;  %v484_v26 = vsub.f32 %v433_v58, %v3273_v48  ;;  %v401_v58 = vsub.f32 %v3236_v29, %v3248_v34 }
 0x13d   : > { %v563_v61 = vsub.f32 %v497_v59, %v3281_v56 }
 0x13e   : > { %v600_v10 = vmul.f32 %v484_v26, %v484_v26 }
 0x13f   : > { %v627_v63 = vmul.f32 %v563_v61, %v563_v61  ;;  %v3284_v0 = vpop.permute.xlu0 %444 }
 0x141   : > { %v429_v2 = vpop.permute.xlu1 %428  ;;  %v3287_v3 = vadd.f32 %v627_v63, %v611_v62 }
 0x142   : > { %v483_v22 = vsub.f32 %v429_v2, %v3273_v48 }
 0x143   : > { %659 = vmin.xlane.f32.xlu0 %v3287_v3  ;;  %v3291_v5 = vpop.permute.xlu0 %456 }
 0x144   : > { %v599_v53 = vmul.f32 %v483_v22, %v483_v22 }
 0x146   : > { %v505_v9 = vpop.permute.xlu1 %504  ;;  %v615_v63 = vadd.f32 %v599_v53, %v583_v60 }
 0x147   : > { %v565_v12 = vsub.f32 %v505_v9, %v3281_v56  ;;  %v469_v13 = vpop.permute.xlu0 %468  ;;  %v402_v9 = vsub.f32 %v3234_v28, %v3248_v34 }
 0x148   : > { %v493_v15 = vsub.f32 %v469_v13, %v3273_v48  ;;  %v584_v13 = vmul.f32 %v400_v4, %v400_v4 }
 0x149   : > { %v629_v18 = vmul.f32 %v565_v12, %v565_v12 }
 0x14a   : > { %v609_v21 = vmul.f32 %v493_v15, %v493_v15  ;;  %v509_v31 = vpop.permute.xlu1 %508  ;;  %v616_v17 = vadd.f32 %v600_v10, %v584_v13 }
 0x14b   : > { %v566_v38 = vsub.f32 %v509_v31, %v3281_v56  ;;  %v3301_v39 = vadd.f32 %v629_v18, %v613_v16  ;;  %v586_v16 = vmul.f32 %v402_v9, %v402_v9 }
 0x14c   : > { %v3303_v43 = vadd.f32 %v609_v21, %v593_v20  ;;  %v501_v23 = vpop.permute.xlu0 %500  ;;  %v585_v20 = vmul.f32 %v401_v58, %v401_v58 }
 0x14d   : > { %v630_v50 = vmul.f32 %v566_v38, %v566_v38  ;;  %v564_v46 = vsub.f32 %v501_v23, %v3281_v56  ;;  %663 = vmin.xlane.f32.xlu0 %v3301_v39 }
 0x14f   : > { %v628_v54 = vmul.f32 %v564_v46, %v564_v46  ;;  %v437_v55 = vpop.permute.xlu1 %436  ;;  %v3309_v57 = vadd.f32 %v630_v50, %v614_v49  ;;  %v405_v50 = vsub.f32 %v3250_v36, %v3248_v34  ;;  %v404_v36 = vsub.f32 %v3243_v32, %v3248_v34 }
 0x150   : > { %v513_v59 = vpop.permute.xlu0 %512  ;;  %v485_v11 = vsub.f32 %v437_v55, %v3273_v48  ;;  %v403_v55 = vsub.f32 %v3245_v33, %v3248_v34 }
 0x151   : > { %v567_v61 = vsub.f32 %v513_v59, %v3281_v56  ;;  %665 = vmin.xlane.f32.xlu0 %v3309_v57  ;;  %v3313_v62 = vadd.f32 %v628_v54, %v612_v52  ;;  %v487_v52 = vsub.f32 %v3284_v0, %v3273_v48  ;;  %v589_v59 = vmul.f32 %v405_v50, %v405_v50 }
 0x152   : > { %v601_v18 = vmul.f32 %v485_v11, %v485_v11  ;;  %v587_v4 = vmul.f32 %v403_v55, %v403_v55  ;;  %v591_v55 = vmul.f32 %v3263_v42, %v3263_v42 }
 0x153   : > { %v631_v1 = vmul.f32 %v567_v61, %v567_v61  ;;  %v441_v2 = vpop.permute.xlu1 %440  ;;  %661 = vmin.xlane.f32.xlu1 %v3313_v62  ;;  %v603_v26 = vmul.f32 %v487_v52, %v487_v52 }
 0x154   : > { %v486_v6 = vsub.f32 %v441_v2, %v3273_v48  ;;  %v525_v8 = vpop.permute.xlu0 %524  ;;  %v617_v38 = vadd.f32 %v601_v18, %v585_v20  ;;  %v490_v18 = vsub.f32 %v3291_v5, %v3273_v48  ;;  %v590_v5 = vmul.f32 %v3253_v37, %v3253_v37 }
 0x155   : > { %v647_v7 = vadd.f32 %v631_v1, %v615_v63  ;;  %v570_v15 = vsub.f32 %v525_v8, %v3281_v56  ;;  %v619_v9 = vadd.f32 %v603_v26, %v587_v4 }
 0x156   : > { %v602_v14 = vmul.f32 %v486_v6, %v486_v6 }
 0x157   : > { %667 = vmin.xlane.f32.xlu1 %v647_v7  ;;  %v634_v31 = vmul.f32 %v570_v15, %v570_v15  ;;  %v691_v13 = vmin.f32 %v3287_v3, %v647_v7  ;;  %v592_v7 = vmul.f32 %v3260_v41, %v3260_v41 }
 0x158   : > { %v517_v12 = vpop.permute.xlu1 %516  ;;  %v618_v21 = vadd.f32 %v602_v14, %v586_v16  ;;  %v537_v49 = vpop.permute.xlu0 %536 }
 0x159   : > { %v568_v25 = vsub.f32 %v517_v12, %v3281_v56  ;;  %v573_v46 = vsub.f32 %v537_v49, %v3281_v56  ;;  %v588_v12 = vmul.f32 %v404_v36, %v404_v36 }
 0x15a   : > { %v3328_v44 = vadd.f32 %v634_v31, %v618_v21  ;;  %v606_v21 = vmul.f32 %v490_v18, %v490_v18 }
 0x15b   : > { %v632_v19 = vmul.f32 %v568_v25, %v568_v25  ;;  %v637_v61 = vmul.f32 %v573_v46, %v573_v46 }
 0x15c   : > { %v521_v28 = vpop.permute.xlu1 %520  ;;  %v622_v46 = vadd.f32 %v606_v21, %v590_v5 }
 0x15d   : > { %v569_v35 = vsub.f32 %v521_v28, %v3281_v56  ;;  %v648_v22 = vadd.f32 %v632_v19, %v616_v17 }
 0x15f   : > { %v633_v29 = vmul.f32 %v569_v35, %v569_v35  ;;  %669 = vmin.xlane.f32.xlu0 %v648_v22  ;;  %v692_v35 = vmin.f32 %v3313_v62, %v648_v22  ;;  %v694_v62 = vmin.f32 %v3309_v57, %v3328_v44 }
 0x161   : > { %v449_v40 = vpop.permute.xlu1 %448  ;;  %v649_v23 = vadd.f32 %v633_v29, %v617_v38 }
 0x162   : > { %v488_v63 = vsub.f32 %v449_v40, %v3273_v48 }
 0x163   : > { %671 = vmin.xlane.f32.xlu1 %v649_v23  ;;  %673 = vmin.xlane.f32.xlu0 %v3328_v44  ;;  %v693_v6 = vmin.f32 %v3301_v39, %v649_v23  ;;  %v549_v39 = vpop.permute.xlu0 %548 }
 0x164   : > { %v604_v10 = vmul.f32 %v488_v63, %v488_v63  ;;  %v576_v20 = vsub.f32 %v549_v39, %v3281_v56  ;;  %v2868_v39 = vmov 1966171168  }
 0x165   : > { %v453_v53 = vpop.permute.xlu1 %452  ;;  %v1251_v18 = vunpack.c.l.s4 %v2868_v39 }
 0x166   : > { %v489_v54 = vsub.f32 %v453_v53, %v3273_v48  ;;  %v620_v25 = vadd.f32 %v604_v10, %v588_v12  ;;  %v640_v38 = vmul.f32 %v576_v20, %v576_v20  ;;  %v3379_v20 = vsub.s32 4, %v3232_v27 }
 0x168   : > { %v605_v60 = vmul.f32 %v489_v54, %v489_v54 }
 0x16a   : > { %v621_v1 = vadd.f32 %v605_v60, %v589_v59  ;;  %v529_v2 = vpop.permute.xlu1 %528 }
 0x16b   : > { %v571_v0 = vsub.f32 %v529_v2, %v3281_v56 }
 0x16c   : > { %v653_v8 = vadd.f32 %v637_v61, %v621_v1 }
 0x16d   : > { %v635_v33 = vmul.f32 %v571_v0, %v571_v0 }
 0x16e   : > { %v533_v11 = vpop.permute.xlu1 %532  ;;  %v3344_v58 = vmin.f32 %v693_v6, %v653_v8  ;;  %v594_v6 = vmul.f32 %v3266_v45, %v3266_v45 }
 0x16f   : > { %v572_v14 = vsub.f32 %v533_v11, %v3281_v56  ;;  %v651_v15 = vadd.f32 %v635_v33, %v619_v9 }
 0x171   : > { %v636_v32 = vmul.f32 %v572_v14, %v572_v14  ;;  %675 = vmin.xlane.f32.xlu1 %v651_v15  ;;  %v695_v34 = vmin.f32 %v691_v13, %v651_v15 }
 0x173   : > { %v461_v16 = vpop.permute.xlu1 %460  ;;  %v652_v17 = vadd.f32 %v636_v32, %v620_v25 }
 0x174   : > { %v491_v31 = vsub.f32 %v461_v16, %v3273_v48 }
 0x175   : > { %677 = vmin.xlane.f32.xlu0 %v652_v17  ;;  %679 = vmin.xlane.f32.xlu1 %v653_v8  ;;  %v696_v49 = vmin.f32 %v692_v35, %v652_v17 }
 0x176   : > { %v607_v52 = vmul.f32 %v491_v31, %v491_v31 }
 0x177   : > { %v465_v19 = vpop.permute.xlu1 %464 }
 0x178   : > { %v492_v3 = vsub.f32 %v465_v19, %v3273_v48  ;;  %v623_v60 = vadd.f32 %v607_v52, %v591_v55  ;;  %v3376_v19 = vsub.s32 3, %v3232_v27 }
 0x17a   : > { %v608_v28 = vmul.f32 %v492_v3, %v492_v3  ;;  %v3382_v3 = vsub.s32 5, %v3232_v27 }
 0x17c   : > { %v624_v29 = vadd.f32 %v608_v28, %v592_v7  ;;  %v541_v40 = vpop.permute.xlu1 %540  ;;  %v3385_v7 = vsub.s32 6, %v3232_v27  ;;  %v3388_v28 = vsub.s32 7, %v3232_v27 }
 0x17d   : > { %v574_v23 = vsub.f32 %v541_v40, %v3281_v56 }
 0x17e   : > { %v656_v50 = vadd.f32 %v640_v38, %v624_v29 }
 0x17f   : > { %v638_v53 = vmul.f32 %v574_v23, %v574_v23 }
 0x180   : > { %v545_v41 = vpop.permute.xlu1 %544  ;;  %v700_v54 = vmin.f32 %v696_v49, %v656_v50 }
 0x181   : > { %v575_v22 = vsub.f32 %v545_v41, %v3281_v56  ;;  %v654_v59 = vadd.f32 %v638_v53, %v622_v46 }
 0x183   : > { %v639_v37 = vmul.f32 %v575_v22, %v575_v22  ;;  %681 = vmin.xlane.f32.xlu0 %v654_v59  ;;  %v698_v61 = vmin.f32 %v694_v62, %v654_v59 }
 0x185   : > { %v473_v26 = vpop.permute.xlu1 %472  ;;  %v655_v63 = vadd.f32 %v639_v37, %v623_v60 }
 0x186   : > { %v494_v2 = vsub.f32 %v473_v26, %v3273_v48 }
 0x187   : > { %v699_v1 = vmin.f32 %v695_v34, %v655_v63  ;;  %683 = vmin.xlane.f32.xlu1 %v655_v63  ;;  %685 = vmin.xlane.f32.xlu0 %v656_v50  ;;  %v714_v34 = vld [vmem:[%s3256_s7] sm:$0x1] }
 0x188   : > { %v610_v0 = vmul.f32 %v494_v2, %v494_v2 }
 0x189   : > { %v703_v36 = vmin.f32 %v699_v1, %v700_v54 }
 0x18a   : > { %v553_v4 = vpop.permute.xlu1 %552  ;;  %v626_v10 = vadd.f32 %v610_v0, %v594_v6 }
 0x18b   : > { %v577_v42 = vsub.f32 %v553_v4, %v3281_v56 }
 0x18d   : > { %v641_v57 = vmul.f32 %v577_v42, %v577_v42 }
 0x18e   : > { %v557_v44 = vpop.permute.xlu1 %556 }
 0x18f   : > { %v578_v8 = vsub.f32 %v557_v44, %v3281_v56  ;;  %v657_v9 = vadd.f32 %v641_v57, %v3303_v43 }
 0x191   : > { %v642_v33 = vmul.f32 %v578_v8, %v578_v8  ;;  %687 = vmin.xlane.f32.xlu1 %v657_v9  ;;  %v701_v48 = vmin.f32 %v3344_v58, %v657_v9  ;;  %v1252_v58 = vunpack.c.0.s8 %v1251_v18 }
 0x193   : > { %v658_v11 = vadd.f32 %v642_v33, %v626_v10  ;;  %v3391_v31 = vsub.s32 %v1252_v58, %v3232_v27 }
 0x195   : > { %v702_v12 = vmin.f32 %v698_v61, %v658_v11  ;;  %689 = vmin.xlane.f32.xlu0 %v658_v11 }
 0x197   : > { %v704_v13 = vmin.f32 %v701_v48, %v702_v12 }
 0x199   : > { %v705_v14 = vmin.f32 %v703_v36, %v704_v13 }
 0x19b   : > { %v706_v15 = vrot.slane %v705_v14, 4 }
 0x19d   : > { %v707_v45 = vmin.f32 %v705_v14, %v706_v15 }
 0x19f   : > { %v708_v25 = vrot.slane %v707_v45, 2 }
 0x1a1   : > { %v709_v56 = vmin.f32 %v707_v45, %v708_v25 }
 0x1a3   : > { %v710_v32 = vrot.slane %v709_v56, 1 }
 0x1a5   : > { %v711_v43 = vmin.f32 %v709_v56, %v710_v32 }
 0x1a7   : > { %v715_v16 = vmin.f32 %v714_v34, %v711_v43 }
 0x1a9   : > { %716 = vst [vmem:[%s3256_s7] sm:$0x1] %v715_v16 }
 0x1b0   : > { %v2207_v17 = vld [vmem:[%s3256_s7] sm:$0x1]  ;;  %s2244_s7 = scalar_lea.hbm %s3840_s29, %s2415_s25 }
 0x1b1   : > { %2208 = vst [vmem:[%s3203_s11] sm:$0x1] %v2207_v17  ;;  %s2869_s11 = smov [#allocation9]  }
 0x1b2   : > { %s2663_s21 = sshll.u32 %s2869_s11, 4  ;;  %s2664_s21 = int_to_ptr.vmem [resolvable:$false] %s2663_s21 }
 0x1b3   : > { %s2665_s12 = scalar_lea.vmem %s2664_s21, 32  ;;  %p2666_p13 = scmp.lt.s32.totalorder %s3621_s20, %s2664_s21 }
 0x1b4   : > { %p2667_p3 = scmp.lt.s32.totalorder %s2665_s12, %s2659_s26 }
 0x1b6   : > { %p2668_p11 = por %p2667_p3, %p2666_p13 }
 0x1b8   : > { %p2669_p12 = pnand %p2668_p11, %p2662_p7 }
 0x1d0   : > { %v660_v21 = vpop.xlane.xlu0 %659 }
 0x1d1   : > { %v737_v35 = vrot.slane %v660_v21, %v3239_v30  ;;  %v741_v38 = vrot.slane %v660_v21, %v3270_v47  ;;  %v745_v29 = vrot.slane %v660_v21, %v3276_v51  ;;  %v749_v40 = vrot.slane %v660_v21, %v3376_v19 }
 0x1d2   : > { %v753_v5 = vrot.slane %v660_v21, %v3379_v20  ;;  %v757_v23 = vrot.slane %v660_v21, %v3382_v3  ;;  %v761_v49 = vrot.slane %v660_v21, %v3385_v7  ;;  %v765_v50 = vrot.slane %v660_v21, %v3388_v28 }
 0x1d3   : > { %v1246_v46 = vcombine.low %v737_v35, %v741_v38  ;;  %v1247_v52 = vcombine.low %v745_v29, %v749_v40 }
 0x1d4   : > { %v1248_v53 = vcombine.low %v753_v5, %v757_v23  ;;  %v1249_v41 = vcombine.low %v761_v49, %v765_v50 }
 0x1d5   : > { %v1256_v54 = vrot.slane %v1246_v46, %v3391_v31  ;;  %v1263_v55 = vrot.slane %v1247_v52, %v3391_v31 }
 0x1d6   : > { %v1270_v62 = vrot.slane %v1248_v53, %v3391_v31  ;;  %v1277_v22 = vrot.slane %v1249_v41, %v3391_v31 }
 0x1d7   : > { %v1278_v59 = vcombine.low %v1256_v54, %v1263_v55 }
 0x1d8   : > { %v1279_v60 = vcombine.low %v1270_v62, %v1277_v22 }
 0x1d9   : > { %v1286_v37 = vrot.slane %v1278_v59, %v3391_v31 }
 0x1da   : > { %v664_v61 = vpop.xlane.xlu0 %663  ;;  %v1293_v26 = vrot.slane %v1279_v60, %v3391_v31 }
 0x1db   : > { %v801_v63 = vrot.slane %v664_v61, %v3239_v30  ;;  %v805_v1 = vrot.slane %v664_v61, %v3270_v47  ;;  %v809_v2 = vrot.slane %v664_v61, %v3276_v51  ;;  %v813_v36 = vrot.slane %v664_v61, %v3376_v19 }
 0x1dc   : > { %v1294_v4 = vcombine.low %v1286_v37, %v1293_v26  ;;  %v817_v42 = vrot.slane %v664_v61, %v3379_v20  ;;  %v821_v0 = vrot.slane %v664_v61, %v3382_v3  ;;  %v825_v57 = vrot.slane %v664_v61, %v3385_v7 }
 0x1dd   : > { %v829_v44 = vrot.slane %v664_v61, %v3388_v28  ;;  %v1344_v6 = vcombine.low %v801_v63, %v805_v1  ;;  %v1345_v8 = vcombine.low %v809_v2, %v813_v36 }
 0x1de   : > { %2031 = vperm.xlu1 %2597, %v1294_v4   ;;  %v666_v9 = vpop.xlane.xlu0 %665  ;;  %v1346_v10 = vcombine.low %v817_v42, %v821_v0 }
 0x1df   : > { %v1347_v33 = vcombine.low %v825_v57, %v829_v44  ;;  %v1354_v48 = vrot.slane %v1344_v6, %v3391_v31  ;;  %v1361_v11 = vrot.slane %v1345_v8, %v3391_v31  ;;  %v833_v12 = vrot.slane %v666_v9, %v3239_v30 }
 0x1e0   : > { %v662_v13 = vpop.xlane.xlu1 %661  ;;  %v1368_v14 = vrot.slane %v1346_v10, %v3391_v31  ;;  %v837_v15 = vrot.slane %v666_v9, %v3270_v47  ;;  %v841_v45 = vrot.slane %v666_v9, %v3276_v51  ;;  %v845_v25 = vrot.slane %v666_v9, %v3376_v19 }
 0x1e1   : > { %v1375_v56 = vrot.slane %v1347_v33, %v3391_v31  ;;  %v1376_v32 = vcombine.low %v1354_v48, %v1361_v11  ;;  %v849_v34 = vrot.slane %v666_v9, %v3379_v20  ;;  %v853_v43 = vrot.slane %v666_v9, %v3382_v3 }
 0x1e2   : > { %v857_v16 = vrot.slane %v666_v9, %v3385_v7  ;;  %v861_v17 = vrot.slane %v666_v9, %v3388_v28  ;;  %v1393_v39 = vcombine.low %v833_v12, %v837_v15  ;;  %v1394_v18 = vcombine.low %v841_v45, %v845_v25 }
 0x1e3   : > { %v1377_v58 = vcombine.low %v1368_v14, %v1375_v56  ;;  %v1384_v21 = vrot.slane %v1376_v32, %v3391_v31  ;;  %v1395_v35 = vcombine.low %v849_v34, %v853_v43  ;;  %v769_v38 = vrot.slane %v662_v13, %v3239_v30 }
 0x1e4   : > { %v1396_v29 = vcombine.low %v857_v16, %v861_v17  ;;  %v1403_v40 = vrot.slane %v1393_v39, %v3391_v31  ;;  %v1410_v5 = vrot.slane %v1394_v18, %v3391_v31  ;;  %v773_v23 = vrot.slane %v662_v13, %v3270_v47  ;;  %v668_v53 = vpop.xlane.xlu1 %667 }
 0x1e5   : > { %v1391_v49 = vrot.slane %v1377_v58, %v3391_v31  ;;  %v1417_v50 = vrot.slane %v1395_v35, %v3391_v31  ;;  %v777_v46 = vrot.slane %v662_v13, %v3276_v51  ;;  %v781_v52 = vrot.slane %v662_v13, %v3376_v19 }
 0x1e6   : > { %v1424_v41 = vrot.slane %v1396_v29, %v3391_v31  ;;  %v1425_v54 = vcombine.low %v1403_v40, %v1410_v5  ;;  %v785_v55 = vrot.slane %v662_v13, %v3379_v20  ;;  %v789_v62 = vrot.slane %v662_v13, %v3382_v3 }
 0x1e7   : > { %v1392_v22 = vcombine.low %v1384_v21, %v1391_v49  ;;  %v793_v59 = vrot.slane %v662_v13, %v3385_v7  ;;  %v797_v60 = vrot.slane %v662_v13, %v3388_v28  ;;  %v1295_v37 = vcombine.low %v769_v38, %v773_v23 }
 0x1e8   : > { %v1426_v61 = vcombine.low %v1417_v50, %v1424_v41  ;;  %v1433_v26 = vrot.slane %v1425_v54, %v3391_v31  ;;  %v1296_v63 = vcombine.low %v777_v46, %v781_v52  ;;  %v1297_v1 = vcombine.low %v785_v55, %v789_v62 }
 0x1e9   : > { %2037 = vperm.xlu1 %2597, %v1392_v22   ;;  %v1298_v2 = vcombine.low %v793_v59, %v797_v60  ;;  %v1305_v36 = vrot.slane %v1295_v37, %v3391_v31  ;;  %v865_v4 = vrot.slane %v668_v53, %v3239_v30  ;;  %v869_v42 = vrot.slane %v668_v53, %v3270_v47 }
 0x1ea   : > { %v1440_v0 = vrot.slane %v1426_v61, %v3391_v31  ;;  %v1312_v57 = vrot.slane %v1296_v63, %v3391_v31  ;;  %v1319_v44 = vrot.slane %v1297_v1, %v3391_v31  ;;  %v873_v6 = vrot.slane %v668_v53, %v3276_v51 }
 0x1eb   : > { %v1326_v8 = vrot.slane %v1298_v2, %v3391_v31  ;;  %v877_v9 = vrot.slane %v668_v53, %v3376_v19  ;;  %v881_v10 = vrot.slane %v668_v53, %v3379_v20  ;;  %v885_v33 = vrot.slane %v668_v53, %v3382_v3 }
 0x1ec   : > { %v1441_v48 = vcombine.low %v1433_v26, %v1440_v0  ;;  %v670_v11 = vpop.xlane.xlu0 %669  ;;  %v1327_v12 = vcombine.low %v1305_v36, %v1312_v57  ;;  %v889_v13 = vrot.slane %v668_v53, %v3385_v7  ;;  %v893_v14 = vrot.slane %v668_v53, %v3388_v28 }
 0x1ed   : > { %v1328_v15 = vcombine.low %v1319_v44, %v1326_v8  ;;  %v1442_v45 = vcombine.low %v865_v4, %v869_v42  ;;  %v1443_v25 = vcombine.low %v873_v6, %v877_v9  ;;  %v1444_v56 = vcombine.low %v881_v10, %v885_v33 }
 0x1ee   : > { %2040 = vperm.xlu1 %2597, %v1441_v48   ;;  %v1335_v32 = vrot.slane %v1327_v12, %v3391_v31  ;;  %v1445_v34 = vcombine.low %v889_v13, %v893_v14  ;;  %v897_v43 = vrot.slane %v670_v11, %v3239_v30  ;;  %v901_v16 = vrot.slane %v670_v11, %v3270_v47 }
 0x1ef   : > { %v1342_v17 = vrot.slane %v1328_v15, %v3391_v31  ;;  %v1452_v39 = vrot.slane %v1442_v45, %v3391_v31  ;;  %v1459_v18 = vrot.slane %v1443_v25, %v3391_v31  ;;  %v1466_v58 = vrot.slane %v1444_v56, %v3391_v31 }
 0x1f0   : > { %v672_v21 = vpop.xlane.xlu1 %671  ;;  %v1473_v35 = vrot.slane %v1445_v34, %v3391_v31  ;;  %v905_v38 = vrot.slane %v670_v11, %v3276_v51  ;;  %v909_v29 = vrot.slane %v670_v11, %v3376_v19  ;;  %v913_v40 = vrot.slane %v670_v11, %v3379_v20  ;;  %v674_v26 = vpop.xlane.xlu0 %673 }
 0x1f1   : > { %v1343_v5 = vcombine.low %v1335_v32, %v1342_v17  ;;  %v1474_v23 = vcombine.low %v1452_v39, %v1459_v18  ;;  %v917_v49 = vrot.slane %v670_v11, %v3382_v3  ;;  %v921_v50 = vrot.slane %v670_v11, %v3385_v7 }
 0x1f2   : > { %v1475_v46 = vcombine.low %v1466_v58, %v1473_v35  ;;  %v925_v52 = vrot.slane %v670_v11, %v3388_v28  ;;  %v1491_v53 = vcombine.low %v897_v43, %v901_v16  ;;  %v1492_v41 = vcombine.low %v905_v38, %v909_v29 }
 0x1f3   : > { %2034 = vperm.xlu0 %2598, %v1343_v5   ;;  %v1482_v54 = vrot.slane %v1474_v23, %v3391_v31  ;;  %v1493_v55 = vcombine.low %v913_v40, %v917_v49  ;;  %v929_v62 = vrot.slane %v672_v21, %v3239_v30  ;;  %v933_v22 = vrot.slane %v672_v21, %v3270_v47 }
 0x1f4   : > { %v1489_v59 = vrot.slane %v1475_v46, %v3391_v31  ;;  %v1494_v60 = vcombine.low %v921_v50, %v925_v52  ;;  %v1501_v37 = vrot.slane %v1491_v53, %v3391_v31  ;;  %v1508_v61 = vrot.slane %v1492_v41, %v3391_v31 }
 0x1f5   : > { %v1515_v63 = vrot.slane %v1493_v55, %v3391_v31  ;;  %v937_v1 = vrot.slane %v672_v21, %v3276_v51  ;;  %v941_v2 = vrot.slane %v672_v21, %v3376_v19  ;;  %v945_v36 = vrot.slane %v672_v21, %v3379_v20 }
 0x1f6   : > { %v1490_v4 = vcombine.low %v1482_v54, %v1489_v59  ;;  %v1522_v42 = vrot.slane %v1494_v60, %v3391_v31  ;;  %v1523_v0 = vcombine.low %v1501_v37, %v1508_v61  ;;  %v949_v57 = vrot.slane %v672_v21, %v3382_v3 }
 0x1f7   : > { %v953_v44 = vrot.slane %v672_v21, %v3385_v7  ;;  %v957_v6 = vrot.slane %v672_v21, %v3388_v28  ;;  %v1540_v8 = vcombine.low %v929_v62, %v933_v22  ;;  %v1541_v9 = vcombine.low %v937_v1, %v941_v2 }
 0x1f8   : > { %2043 = vperm.xlu1 %2597, %v1490_v4   ;;  %v1524_v10 = vcombine.low %v1515_v63, %v1522_v42  ;;  %v1531_v33 = vrot.slane %v1523_v0, %v3391_v31  ;;  %v1542_v48 = vcombine.low %v945_v36, %v949_v57  ;;  %v961_v11 = vrot.slane %v674_v26, %v3239_v30 }
 0x1f9   : > { %v1543_v12 = vcombine.low %v953_v44, %v957_v6  ;;  %v1550_v13 = vrot.slane %v1540_v8, %v3391_v31  ;;  %v1557_v14 = vrot.slane %v1541_v9, %v3391_v31  ;;  %v965_v15 = vrot.slane %v674_v26, %v3270_v47 }
 0x1fa   : > { %v1538_v45 = vrot.slane %v1524_v10, %v3391_v31  ;;  %v1564_v25 = vrot.slane %v1542_v48, %v3391_v31  ;;  %v969_v56 = vrot.slane %v674_v26, %v3276_v51  ;;  %v973_v32 = vrot.slane %v674_v26, %v3376_v19 }
 0x1fb   : > { %v1571_v34 = vrot.slane %v1543_v12, %v3391_v31  ;;  %v1572_v43 = vcombine.low %v1550_v13, %v1557_v14  ;;  %v977_v16 = vrot.slane %v674_v26, %v3379_v20  ;;  %v981_v17 = vrot.slane %v674_v26, %v3382_v3 }
 0x1fc   : > { %v1539_v39 = vcombine.low %v1531_v33, %v1538_v45  ;;  %v985_v18 = vrot.slane %v674_v26, %v3385_v7  ;;  %v989_v58 = vrot.slane %v674_v26, %v3388_v28  ;;  %v1589_v21 = vcombine.low %v961_v11, %v965_v15 }
 0x1fd   : > { %v1573_v35 = vcombine.low %v1564_v25, %v1571_v34  ;;  %v1580_v38 = vrot.slane %v1572_v43, %v3391_v31  ;;  %v1590_v29 = vcombine.low %v969_v56, %v973_v32  ;;  %v1591_v40 = vcombine.low %v977_v16, %v981_v17 }
 0x1fe   : > { %2046 = vperm.xlu1 %2597, %v1539_v39   ;;  %v676_v5 = vpop.xlane.xlu1 %675  ;;  %v1592_v23 = vcombine.low %v985_v18, %v989_v58  ;;  %v1599_v49 = vrot.slane %v1589_v21, %v3391_v31 }
 0x1ff   : > { %v1587_v50 = vrot.slane %v1573_v35, %v3391_v31  ;;  %v1606_v46 = vrot.slane %v1590_v29, %v3391_v31  ;;  %v1613_v52 = vrot.slane %v1591_v40, %v3391_v31  ;;  %v993_v53 = vrot.slane %v676_v5, %v3239_v30 }
 0x200   : > { %v1620_v41 = vrot.slane %v1592_v23, %v3391_v31  ;;  %v997_v54 = vrot.slane %v676_v5, %v3270_v47  ;;  %v1001_v55 = vrot.slane %v676_v5, %v3276_v51  ;;  %v1005_v62 = vrot.slane %v676_v5, %v3376_v19 }
 0x201   : > { %v1588_v22 = vcombine.low %v1580_v38, %v1587_v50  ;;  %v1621_v59 = vcombine.low %v1599_v49, %v1606_v46  ;;  %v1009_v60 = vrot.slane %v676_v5, %v3379_v20  ;;  %v1013_v37 = vrot.slane %v676_v5, %v3382_v3 }
 0x202   : > { %v1622_v61 = vcombine.low %v1613_v52, %v1620_v41  ;;  %v680_v26 = vpop.xlane.xlu1 %679  ;;  %v1017_v63 = vrot.slane %v676_v5, %v3385_v7  ;;  %v1021_v1 = vrot.slane %v676_v5, %v3388_v28  ;;  %v1638_v2 = vcombine.low %v993_v53, %v997_v54  ;;  %v678_v9 = vpop.xlane.xlu0 %677 }
 0x203   : > { %2049 = vperm.xlu1 %2597, %v1588_v22   ;;  %v1629_v36 = vrot.slane %v1621_v59, %v3391_v31  ;;  %v1639_v4 = vcombine.low %v1001_v55, %v1005_v62  ;;  %v1640_v42 = vcombine.low %v1009_v60, %v1013_v37  ;;  %v1057_v0 = vrot.slane %v680_v26, %v3239_v30 }
 0x204   : > { %v1636_v57 = vrot.slane %v1622_v61, %v3391_v31  ;;  %v1641_v44 = vcombine.low %v1017_v63, %v1021_v1  ;;  %v1648_v6 = vrot.slane %v1638_v2, %v3391_v31  ;;  %v1061_v8 = vrot.slane %v680_v26, %v3270_v47 }
 0x205   : > { %v1655_v10 = vrot.slane %v1639_v4, %v3391_v31  ;;  %v1662_v33 = vrot.slane %v1640_v42, %v3391_v31  ;;  %v1065_v48 = vrot.slane %v680_v26, %v3276_v51  ;;  %v1069_v11 = vrot.slane %v680_v26, %v3376_v19 }
 0x206   : > { %v1637_v12 = vcombine.low %v1629_v36, %v1636_v57  ;;  %v1669_v13 = vrot.slane %v1641_v44, %v3391_v31  ;;  %v1073_v14 = vrot.slane %v680_v26, %v3379_v20  ;;  %v1077_v15 = vrot.slane %v680_v26, %v3382_v3 }
 0x207   : > { %v1670_v45 = vcombine.low %v1648_v6, %v1655_v10  ;;  %v1081_v25 = vrot.slane %v680_v26, %v3385_v7  ;;  %v1085_v56 = vrot.slane %v680_v26, %v3388_v28  ;;  %v1736_v32 = vcombine.low %v1057_v0, %v1061_v8 }
 0x208   : > { %2052 = vperm.xlu1 %2597, %v1637_v12   ;;  %v1671_v34 = vcombine.low %v1662_v33, %v1669_v13  ;;  %v1737_v43 = vcombine.low %v1065_v48, %v1069_v11  ;;  %v1738_v16 = vcombine.low %v1073_v14, %v1077_v15  ;;  %v1025_v17 = vrot.slane %v678_v9, %v3239_v30 }
 0x209   : > { %v1678_v39 = vrot.slane %v1670_v45, %v3391_v31  ;;  %v1739_v18 = vcombine.low %v1081_v25, %v1085_v56  ;;  %v1746_v58 = vrot.slane %v1736_v32, %v3391_v31  ;;  %v1029_v21 = vrot.slane %v678_v9, %v3270_v47 }
 0x20a   : > { %v1685_v35 = vrot.slane %v1671_v34, %v3391_v31  ;;  %v1753_v38 = vrot.slane %v1737_v43, %v3391_v31  ;;  %v1760_v29 = vrot.slane %v1738_v16, %v3391_v31  ;;  %v1033_v40 = vrot.slane %v678_v9, %v3276_v51 }
 0x20b   : > { %v1767_v5 = vrot.slane %v1739_v18, %v3391_v31  ;;  %v1037_v23 = vrot.slane %v678_v9, %v3376_v19  ;;  %v1041_v49 = vrot.slane %v678_v9, %v3379_v20  ;;  %v1045_v50 = vrot.slane %v678_v9, %v3382_v3 }
 0x20c   : > { %v1686_v46 = vcombine.low %v1678_v39, %v1685_v35  ;;  %v1768_v52 = vcombine.low %v1746_v58, %v1753_v38  ;;  %v1049_v53 = vrot.slane %v678_v9, %v3385_v7  ;;  %v1053_v41 = vrot.slane %v678_v9, %v3388_v28 }
 0x20d   : > { %v1769_v54 = vcombine.low %v1760_v29, %v1767_v5  ;;  %v1687_v55 = vcombine.low %v1025_v17, %v1029_v21  ;;  %v1688_v62 = vcombine.low %v1033_v40, %v1037_v23  ;;  %v1689_v22 = vcombine.low %v1041_v49, %v1045_v50 }
 0x20e   : > { %2055 = vperm.xlu1 %2597, %v1686_v46   ;;  %v1776_v59 = vrot.slane %v1768_v52, %v3391_v31  ;;  %v1690_v60 = vcombine.low %v1049_v53, %v1053_v41 }
 0x20f   : > { %v1783_v37 = vrot.slane %v1769_v54, %v3391_v31  ;;  %v1697_v61 = vrot.slane %v1687_v55, %v3391_v31  ;;  %v1704_v26 = vrot.slane %v1688_v62, %v3391_v31  ;;  %v1711_v63 = vrot.slane %v1689_v22, %v3391_v31 }
 0x210   : > { %v1718_v1 = vrot.slane %v1690_v60, %v3391_v31  ;;  %v682_v2 = vpop.xlane.xlu0 %681 }
 0x211   : > { %v1784_v36 = vcombine.low %v1776_v59, %v1783_v37  ;;  %v1719_v4 = vcombine.low %v1697_v61, %v1704_v26  ;;  %v1089_v42 = vrot.slane %v682_v2, %v3239_v30  ;;  %v1093_v0 = vrot.slane %v682_v2, %v3270_v47 }
 0x212   : > { %v1720_v57 = vcombine.low %v1711_v63, %v1718_v1  ;;  %v1097_v44 = vrot.slane %v682_v2, %v3276_v51  ;;  %v1101_v6 = vrot.slane %v682_v2, %v3376_v19  ;;  %v1105_v8 = vrot.slane %v682_v2, %v3379_v20 }
 0x213   : > { %2061 = vperm.xlu0 %2598, %v1784_v36   ;;  %v1727_v9 = vrot.slane %v1719_v4, %v3391_v31  ;;  %v1109_v10 = vrot.slane %v682_v2, %v3382_v3  ;;  %v1113_v33 = vrot.slane %v682_v2, %v3385_v7  ;;  %v1117_v48 = vrot.slane %v682_v2, %v3388_v28 }
 0x214   : > { %v1734_v11 = vrot.slane %v1720_v57, %v3391_v31  ;;  %v684_v12 = vpop.xlane.xlu1 %683  ;;  %v1785_v13 = vcombine.low %v1089_v42, %v1093_v0  ;;  %v1786_v14 = vcombine.low %v1097_v44, %v1101_v6  ;;  %v686_v34 = vpop.xlane.xlu0 %685 }
 0x215   : > { %v1787_v15 = vcombine.low %v1105_v8, %v1109_v10  ;;  %v1788_v45 = vcombine.low %v1113_v33, %v1117_v48  ;;  %v1121_v25 = vrot.slane %v684_v12, %v3239_v30  ;;  %v1125_v56 = vrot.slane %v684_v12, %v3270_v47 }
 0x216   : > { %v1735_v32 = vcombine.low %v1727_v9, %v1734_v11  ;;  %v1795_v43 = vrot.slane %v1785_v13, %v3391_v31  ;;  %v1802_v16 = vrot.slane %v1786_v14, %v3391_v31  ;;  %v1129_v17 = vrot.slane %v684_v12, %v3276_v51 }
 0x217   : > { %v1809_v39 = vrot.slane %v1787_v15, %v3391_v31  ;;  %v1816_v18 = vrot.slane %v1788_v45, %v3391_v31  ;;  %v1133_v58 = vrot.slane %v684_v12, %v3376_v19  ;;  %v1137_v21 = vrot.slane %v684_v12, %v3379_v20 }
 0x218   : > { %2058 = vperm.xlu1 %2597, %v1735_v32   ;;  %v1817_v35 = vcombine.low %v1795_v43, %v1802_v16  ;;  %v1141_v38 = vrot.slane %v684_v12, %v3382_v3  ;;  %v1145_v29 = vrot.slane %v684_v12, %v3385_v7  ;;  %v1149_v40 = vrot.slane %v684_v12, %v3388_v28 }
 0x219   : > { %v1818_v5 = vcombine.low %v1809_v39, %v1816_v18  ;;  %v1834_v23 = vcombine.low %v1121_v25, %v1125_v56  ;;  %v1835_v49 = vcombine.low %v1129_v17, %v1133_v58  ;;  %v1153_v50 = vrot.slane %v686_v34, %v3239_v30 }
 0x21a   : > { %v1825_v46 = vrot.slane %v1817_v35, %v3391_v31  ;;  %v1836_v52 = vcombine.low %v1137_v21, %v1141_v38  ;;  %v1837_v53 = vcombine.low %v1145_v29, %v1149_v40  ;;  %v1157_v41 = vrot.slane %v686_v34, %v3270_v47 }
 0x21b   : > { %v1832_v54 = vrot.slane %v1818_v5, %v3391_v31  ;;  %v1844_v55 = vrot.slane %v1834_v23, %v3391_v31  ;;  %v1851_v62 = vrot.slane %v1835_v49, %v3391_v31  ;;  %v1161_v22 = vrot.slane %v686_v34, %v3276_v51 }
 0x21c   : > { %v1858_v59 = vrot.slane %v1836_v52, %v3391_v31  ;;  %v1865_v60 = vrot.slane %v1837_v53, %v3391_v31  ;;  %v1165_v37 = vrot.slane %v686_v34, %v3376_v19  ;;  %v1169_v61 = vrot.slane %v686_v34, %v3379_v20 }
 0x21d   : > { %v1833_v26 = vcombine.low %v1825_v46, %v1832_v54  ;;  %v1866_v63 = vcombine.low %v1844_v55, %v1851_v62  ;;  %v1173_v1 = vrot.slane %v686_v34, %v3382_v3  ;;  %v1177_v2 = vrot.slane %v686_v34, %v3385_v7 }
 0x21e   : > { %v688_v36 = vpop.xlane.xlu1 %687  ;;  %v1867_v4 = vcombine.low %v1858_v59, %v1865_v60  ;;  %v1181_v42 = vrot.slane %v686_v34, %v3388_v28  ;;  %v1883_v0 = vcombine.low %v1153_v50, %v1157_v41  ;;  %v1884_v57 = vcombine.low %v1161_v22, %v1165_v37 }
 0x21f   : > { %2064 = vperm.xlu1 %2597, %v1833_v26   ;;  %v1874_v44 = vrot.slane %v1866_v63, %v3391_v31  ;;  %v1885_v6 = vcombine.low %v1169_v61, %v1173_v1  ;;  %v1185_v8 = vrot.slane %v688_v36, %v3239_v30  ;;  %v1189_v9 = vrot.slane %v688_v36, %v3270_v47 }
 0x220   : > { %v1881_v10 = vrot.slane %v1867_v4, %v3391_v31  ;;  %v1886_v33 = vcombine.low %v1177_v2, %v1181_v42  ;;  %v1893_v48 = vrot.slane %v1883_v0, %v3391_v31  ;;  %v1900_v11 = vrot.slane %v1884_v57, %v3391_v31 }
 0x221   : > { %v1907_v12 = vrot.slane %v1885_v6, %v3391_v31  ;;  %v1193_v13 = vrot.slane %v688_v36, %v3276_v51  ;;  %v1197_v14 = vrot.slane %v688_v36, %v3376_v19  ;;  %v1201_v15 = vrot.slane %v688_v36, %v3379_v20 }
 0x222   : > { %v1882_v45 = vcombine.low %v1874_v44, %v1881_v10  ;;  %v1914_v25 = vrot.slane %v1886_v33, %v3391_v31  ;;  %v1915_v56 = vcombine.low %v1893_v48, %v1900_v11  ;;  %v690_v32 = vpop.xlane.xlu0 %689  ;;  %v1205_v34 = vrot.slane %v688_v36, %v3382_v3 }
 0x223   : > { %v1209_v43 = vrot.slane %v688_v36, %v3385_v7  ;;  %v1213_v16 = vrot.slane %v688_v36, %v3388_v28  ;;  %v1932_v17 = vcombine.low %v1185_v8, %v1189_v9  ;;  %v1933_v39 = vcombine.low %v1193_v13, %v1197_v14 }
 0x224   : > { %2067 = vperm.xlu0 %2598, %v1882_v45   ;;  %v1916_v18 = vcombine.low %v1907_v12, %v1914_v25  ;;  %v1923_v58 = vrot.slane %v1915_v56, %v3391_v31  ;;  %v1934_v21 = vcombine.low %v1201_v15, %v1205_v34  ;;  %v1217_v35 = vrot.slane %v690_v32, %v3239_v30 }
 0x225   : > { %v1935_v38 = vcombine.low %v1209_v43, %v1213_v16  ;;  %v1942_v29 = vrot.slane %v1932_v17, %v3391_v31  ;;  %v1949_v40 = vrot.slane %v1933_v39, %v3391_v31  ;;  %v1221_v5 = vrot.slane %v690_v32, %v3270_v47 }
 0x226   : > { %v1930_v23 = vrot.slane %v1916_v18, %v3391_v31  ;;  %v1956_v49 = vrot.slane %v1934_v21, %v3391_v31  ;;  %v1225_v50 = vrot.slane %v690_v32, %v3276_v51  ;;  %v1229_v46 = vrot.slane %v690_v32, %v3376_v19 }
 0x227   : > { %v1963_v52 = vrot.slane %v1935_v38, %v3391_v31  ;;  %v1964_v53 = vcombine.low %v1942_v29, %v1949_v40  ;;  %v1233_v30 = vrot.slane %v690_v32, %v3379_v20  ;;  %v1237_v41 = vrot.slane %v690_v32, %v3382_v3 }
 0x228   : > { %v1931_v54 = vcombine.low %v1923_v58, %v1930_v23  ;;  %v1241_v55 = vrot.slane %v690_v32, %v3385_v7  ;;  %v1245_v47 = vrot.slane %v690_v32, %v3388_v28  ;;  %v1981_v62 = vcombine.low %v1217_v35, %v1221_v5 }
 0x229   : > { %v1965_v22 = vcombine.low %v1956_v49, %v1963_v52  ;;  %v1972_v59 = vrot.slane %v1964_v53, %v3391_v31  ;;  %v1982_v60 = vcombine.low %v1225_v50, %v1229_v46  ;;  %v1983_v51 = vcombine.low %v1233_v30, %v1237_v41 }
 0x22a   : > { %2070 = vperm.xlu1 %2597, %v1931_v54   ;;  %v1984_v19 = vcombine.low %v1241_v55, %v1245_v47  ;;  %v1991_v20 = vrot.slane %v1981_v62, %v3391_v31 }
 0x22b   : > { %v1979_v3 = vrot.slane %v1965_v22, %v3391_v31  ;;  %v1998_v7 = vrot.slane %v1982_v60, %v3391_v31  ;;  %v2005_v28 = vrot.slane %v1983_v51, %v3391_v31 }
 0x22c   : > { %v2012_v37 = vrot.slane %v1984_v19, %v3391_v31 }
 0x22d   : > { %v1980_v61 = vcombine.low %v1972_v59, %v1979_v3  ;;  %v2013_v26 = vcombine.low %v1991_v20, %v1998_v7 }
 0x22e   : > { %v2014_v63 = vcombine.low %v2005_v28, %v2012_v37 }
 0x22f   : > { %2073 = vperm.xlu0 %2598, %v1980_v61   ;;  %v2021_v1 = vrot.slane %v2013_v26, %v3391_v31 }
 0x230   : > { %v2028_v2 = vrot.slane %v2014_v63, %v3391_v31 }
 0x232   : > { %v2029_v36 = vcombine.low %v2021_v1, %v2028_v2 }
 0x234   : > { %2076 = vperm.xlu1 %2597, %v2029_v36  }
 0x235   : > { %2672 = shalt.err (!%p2669_p12)
}
 0x236   : > { %s2673_s6 = scalar_lea.hbm %s2244_s7, 16  ;;  %s2677_s5 = scalar_lea.hbm %s3840_s29, 192 }
 0x237   : > { %p2674_p1 = scmp.ne.s32.totalorder %s2244_s7, %s2673_s6  ;;  %p2678_p10 = scmp.lt.u32.totalorder %s2244_s7, %s3840_s29 }
 0x238   : > { %p2679_p5 = scmp.lt.u32.totalorder %s2677_s5, %s2673_s6  ;;  %p2681_p2 = scmp.lt.u32.totalorder %s2673_s6, %s2244_s7 }
 0x239   : > { %p2675_p6 = pnand %p2674_p1, %p3841_p9 }
 0x23a   : > { %p2680_p4 = por %p2679_p5, %p2678_p10 }
 0x23b   : > { %p2676_p0 = pneg %p2675_p6 }
 0x23c   : > { %p2682_p8 = por %p2681_p2, %p2680_p4 }
 0x23e   : > { %p2683_p7 = pnand %p2682_p8, %p2676_p0 }
 0x240   : > { %2686 = shalt.err (!%p2683_p7)
}
 0x241   : > { %2426 = dma.vmem_to_hbm [thread:$0]  (%p3841_p9), %s3621_s20, 16, %s2244_s7, %s2214_s1   ;;  %v3645_v6 = vand.u32 127, %v391_v24  ;;  %vm2089_vm0 = vcmask 130112   ;;  %vm2096_vm1 = vcmask 195712   ;;  %vm2103_vm2 = vcmask 261312  }
 0x242   : > { %vm2110_vm3 = vcmask 326912   ;;  %vm2117_vm4 = vcmask 392512   ;;  %vm2124_vm5 = vcmask 458112   ;;  %vm2131_vm6 = vcmask 523712   ;;  %s2413_s1 = sshll.u32 %s2841_s23, 1  ;;  %s2229_s20 = sshll.u32 %s3199_s2, 4  ;;  %s3692_s20 = int_to_ptr.vmem [resolvable:$true] %s2229_s20 }
 0x243   : > { %v2084_v8 = vadd.s32 4294967288, %v3645_v6  ;;  %v2091_v33 = vadd.s32 4294967280, %v3645_v6  ;;  %v2082_v11 = vsub.s32 %v3645_v6, %v3232_v27  ;;  %v2098_v13 = vadd.s32 4294967272, %v3645_v6  ;;  %s2225_s26 = sadd.s32 %s3839_s28, %s2413_s1  ;;  %s3842_s7 = sld [smem:[#allocation28_spill]] }
 0x244   : > { %v2105_v24 = vadd.s32 4294967264, %v3645_v6  ;;  %v2112_v25 = vadd.s32 4294967256, %v3645_v6  ;;  %v2119_v56 = vadd.s32 4294967248, %v3645_v6  ;;  %v2126_v16 = vadd.s32 4294967240, %v3645_v6  ;;  %s2414_s10 = sshll.u32 %s2225_s26, 4  ;;  %s2210_s28 = scalar_lea.sflag [#allocation5], %s3179_s4 }
 0x245   : > { %v2087_v10 = vsub.s32 %v2084_v8, %v3232_v27  ;;  %v2094_v15 = vsub.s32 %v2091_v33, %v3232_v27  ;;  %v2101_v34 = vsub.s32 %v2098_v13, %v3232_v27  ;;  %v2133_v18 = vadd.s32 4294967232, %v3645_v6  ;;  %s2687_s21 = scalar_lea.vmem %s3692_s20, 16  ;;  %p3843_p13 = scmp.ne.s32.totalorder %s3828_s15, 0 }
 0x246   : > { %v2108_v39 = vsub.s32 %v2105_v24, %v3232_v27  ;;  %v2115_v58 = vsub.s32 %v2112_v25, %v3232_v27  ;;  %v2140_v21 = vadd.s32 4294967224, %v3645_v6  ;;  %v2122_v38 = vsub.s32 %v2119_v56, %v3232_v27  ;;  %v717_v25 = vld [vmem:[%s3199_s2] sm:$0x1]  ;;  %p2688_p9 = scmp.ne.s32.totalorder %s3692_s20, %s2687_s21  ;;  %s2870_s12 = smov [#allocation8]  }
 0x247   : > { %v2129_v40 = vsub.s32 %v2126_v16, %v3232_v27  ;;  %v2136_v23 = vsub.s32 %v2133_v18, %v3232_v27  ;;  %v2147_v50 = vadd.s32 4294967216, %v3645_v6  ;;  %v2154_v30 = vadd.s32 4294967208, %v3645_v6  ;;  %s2691_s6 = sshll.u32 %s2870_s12, 4  ;;  %s2692_s6 = int_to_ptr.vmem [resolvable:$false] %s2691_s6 }
 0x248   : > { %v2143_v53 = vsub.s32 %v2140_v21, %v3232_v27  ;;  %v2161_v54 = vadd.s32 4294967200, %v3645_v6  ;;  %vm2138_vm7 = vcmask 589312   ;;  %v2168_v3 = vadd.s32 4294967192, %v3645_v6  ;;  %p2689_p3 = pnand %p2688_p9, %p3843_p13  ;;  %s2693_s3 = scalar_lea.vmem %s2692_s6, 32 }
 0x249   : > { %v2150_v59 = vsub.s32 %v2147_v50, %v3232_v27  ;;  %v2157_v20 = vsub.s32 %v2154_v30, %v3232_v27  ;;  %vm2145_vm8 = vcmask 654912   ;;  %v2175_v37 = vadd.s32 4294967184, %v3645_v6  ;;  %s3690_s11 = scalar_lea.hbm %s3842_s7, %s2414_s10  ;;  %p2694_p12 = scmp.lt.s32.totalorder %s3692_s20, %s2692_s6 }
 0x24a   : > { %v2164_v28 = vsub.s32 %v2161_v54, %v3232_v27  ;;  %vm2152_vm9 = vcmask 720512   ;;  %vm2159_vm10 = vcmask 786112   ;;  %vm2166_vm11 = vcmask 851712   ;;  %p2690_p11 = pneg %p2689_p3  ;;  %p2695_p1 = scmp.lt.s32.totalorder %s2693_s3, %s2687_s21 }
 0x24b   : > { %vm2173_vm12 = vcmask 917312   ;;  %vm2180_vm13 = vcmask 982912   ;;  %vm2187_vm14 = vcmask 1048512  }
 0x24c   : > { %p2696_p6 = por %p2695_p1, %p2694_p12 }
 0x24e   : > { %p2697_p0 = pnand %p2696_p6, %p2690_p11 }
 0x25d   : > { %v2032_v4 = vpop.permute.xlu1 %2031 }
 0x25e   : > { %v2083_v45 = vrot.slane %v2032_v4, %v2082_v11  ;;  %v2171_v4 = vsub.s32 %v2168_v3, %v3232_v27 }
 0x268   : > { %v2038_v42 = vpop.permute.xlu1 %2037 }
 0x269   : > { %v2095_v17 = vrot.slane %v2038_v42, %v2094_v15  ;;  %v2182_v42 = vadd.s32 4294967176, %v3645_v6 }
 0x26d   : > { %v2041_v0 = vpop.permute.xlu1 %2040 }
 0x26e   : > { %v2102_v29 = vrot.slane %v2041_v0, %v2101_v34 }
 0x272   : > { %v2035_v48 = vpop.permute.xlu0 %2034 }
 0x273   : > { %v2088_v14 = vrot.slane %v2035_v48, %v2087_v10  ;;  %v2185_v48 = vsub.s32 %v2182_v42, %v3232_v27 }
 0x275   : > { %v2090_v43 = vsel %vm2089_vm0, %v2088_v14, %v2083_v45 }
 0x276   : > { %v2097_v35 = vsel %vm2096_vm1, %v2095_v17, %v2090_v43 }
 0x277   : > { %v2044_v57 = vpop.permute.xlu1 %2043  ;;  %v2104_v46 = vsel %vm2103_vm2, %v2102_v29, %v2097_v35 }
 0x278   : > { %v2109_v5 = vrot.slane %v2044_v57, %v2108_v39 }
 0x27a   : > { %v2111_v62 = vsel %vm2110_vm3, %v2109_v5, %v2104_v46 }
 0x27d   : > { %v2047_v44 = vpop.permute.xlu1 %2046 }
 0x27e   : > { %v2116_v52 = vrot.slane %v2047_v44, %v2115_v58  ;;  %v2178_v44 = vsub.s32 %v2175_v37, %v3232_v27 }
 0x280   : > { %v2118_v51 = vsel %vm2117_vm4, %v2116_v52, %v2111_v62 }
 0x282   : > { %v2050_v9 = vpop.permute.xlu1 %2049 }
 0x283   : > { %v2123_v41 = vrot.slane %v2050_v9, %v2122_v38 }
 0x285   : > { %v2125_v7 = vsel %vm2124_vm5, %v2123_v41, %v2118_v51 }
 0x287   : > { %v2053_v12 = vpop.permute.xlu1 %2052 }
 0x288   : > { %v2130_v55 = vrot.slane %v2053_v12, %v2129_v40 }
 0x28a   : > { %v2132_v61 = vsel %vm2131_vm6, %v2130_v55, %v2125_v7 }
 0x28d   : > { %v2056_v32 = vpop.permute.xlu1 %2055 }
 0x28e   : > { %v2137_v22 = vrot.slane %v2056_v32, %v2136_v23 }
 0x290   : > { %v2139_v63 = vsel %vm2138_vm7, %v2137_v22, %v2132_v61 }
 0x292   : > { %v2062_v47 = vpop.permute.xlu0 %2061 }
 0x293   : > { %v2151_v1 = vrot.slane %v2062_v47, %v2150_v59 }
 0x297   : > { %v2059_v49 = vpop.permute.xlu1 %2058 }
 0x298   : > { %v2144_v19 = vrot.slane %v2059_v49, %v2143_v53 }
 0x29a   : > { %v2146_v2 = vsel %vm2145_vm8, %v2144_v19, %v2139_v63 }
 0x29b   : > { %v2153_v9 = vsel %vm2152_vm9, %v2151_v1, %v2146_v2 }
 0x29e   : > { %v2065_v60 = vpop.permute.xlu1 %2064 }
 0x29f   : > { %v2158_v36 = vrot.slane %v2065_v60, %v2157_v20 }
 0x2a1   : > { %v2160_v10 = vsel %vm2159_vm10, %v2158_v36, %v2153_v9 }
 0x2a3   : > { %v2068_v26 = vpop.permute.xlu0 %2067 }
 0x2a4   : > { %v2165_v57 = vrot.slane %v2068_v26, %v2164_v28 }
 0x2a6   : > { %v2167_v11 = vsel %vm2166_vm11, %v2165_v57, %v2160_v10 }
 0x2a9   : > { %v2071_v0 = vpop.permute.xlu1 %2070 }
 0x2aa   : > { %v2172_v33 = vrot.slane %v2071_v0, %v2171_v4 }
 0x2ac   : > { %v2174_v13 = vsel %vm2173_vm12, %v2172_v33, %v2167_v11 }
 0x2ae   : > { %v2074_v8 = vpop.permute.xlu0 %2073 }
 0x2af   : > { %v2179_v12 = vrot.slane %v2074_v8, %v2178_v44 }
 0x2b1   : > { %v2181_v15 = vsel %vm2180_vm13, %v2179_v12, %v2174_v13 }
 0x2b3   : > { %v2077_v6 = vpop.permute.xlu1 %2076 }
 0x2b4   : > { %v2186_v14 = vrot.slane %v2077_v6, %v2185_v48 }
 0x2b6   : > { %v2188_v24 = vsel %vm2187_vm14, %v2186_v14, %v2181_v15 }
 0x2b7   : > { %v2195_v45 = vrot.slane %v2188_v24, %v3391_v31 }
 0x2b9   : > { %v2202_v27 = vrot.slane %v2195_v45, %v3391_v31 }
 0x2bb   : > { %v2204_v56 = vmin.f32 %v717_v25, %v2202_v27 }
 0x2bd   : > { %2205 = vst [vmem:[%s3199_s2] sm:$0x1] %v2204_v56 }
 0x2be   : > { %2700 = shalt.err (!%p2697_p0)
}
 0x2bf   : > { %s2701_s4 = scalar_lea.hbm %s3690_s11, 16  ;;  %s2705_s5 = scalar_lea.hbm %s3842_s7, 64 }
 0x2c0   : > { %p2702_p10 = scmp.ne.s32.totalorder %s3690_s11, %s2701_s4  ;;  %p2706_p2 = scmp.lt.u32.totalorder %s3690_s11, %s3842_s7 }
 0x2c1   : > { %p2707_p8 = scmp.lt.u32.totalorder %s2705_s5, %s2701_s4  ;;  %p2709_p9 = scmp.lt.u32.totalorder %s2701_s4, %s3690_s11 }
 0x2c2   : > { %p2703_p5 = pnand %p2702_p10, %p3843_p13 }
 0x2c3   : > { %p2708_p7 = por %p2707_p8, %p2706_p2 }
 0x2c4   : > { %p2704_p4 = pneg %p2703_p5 }
 0x2c5   : > { %p2710_p3 = por %p2709_p9, %p2708_p7 }
 0x2c7   : > { %p2711_p11 = pnand %p2710_p3, %p2704_p4 }
 0x2c9   : > { %2714 = shalt.err (!%p2711_p11)
}
 0x2ca   : > { %2425 = dma.vmem_to_hbm [thread:$0]  (%p3843_p13), %s3692_s20, 16, %s3690_s11, %s2210_s28  }
 0x2cb PF: > { %s3844_s1 = sld [smem:[#allocation16_spill]]  ;;  %s3845_s26 = sld [smem:[#allocation21_spill]] }
 0x2cc   : > { %p2444_p12 = scmp.ge.s32.totalorder %s2857_s27, 2 }
 0x2d1   : > { %s2258_s10 = sand.u32 1, %s3844_s1   ;;  %p3846_p1 = scmp.ne.s32.totalorder %s3845_s26, 0 }
 0x2d2   : > { %s2259_s0 = scalar_lea.sflag [#allocation5], %s2258_s10 }
 0x2d3   : > { %p2437_p6 = pnand %p2444_p12, %p3846_p1 }
 0x2d5   : > { %2788 = dma.done.wait (!%p2437_p6), %s2259_s0, 16  }
 0x2d6   : > { %2790 = vsyncadd (!%p2437_p6), %s2259_s0, 4294967280  ;;  %s3847_s23 = sld [smem:[#allocation15_spill]]  ;;  %p3848_p0 = scmp.ne.s32.totalorder %s3832_s22, 0 }
 0x2d8   : > { %p2440_p10 = pnand %p2444_p12, %p3848_p0 }
 0x2dc   : > { %s2266_s21 = sand.u32 1, %s3847_s23  }
 0x2dd   : > { %s2267_s15 = scalar_lea.sflag [#allocation10], %s2266_s21 }
 0x2de   : > { %2792 = dma.done.wait (!%p2440_p10), %s2267_s15, 16  }
 0x2df   : > { %2794 = vsyncadd (!%p2440_p10), %s2267_s15, 4294967280  ;;  %s26_s27 = sadd.s32 1, %s2857_s27   ;;  %s3850_s11 = sld [smem:[#allocation17_spill]] }
 0x2e0   : > { %p3725_p13 = scmp.ge.s32.totalorder %s26_s27, 14   ;;  %s3851_s28 = sld [smem:[#allocation25_spill]] }
 0x2e1   : > { %s3852_s22 = sld [smem:[#allocation19_spill]]  ;;  %s3853_s23 = sld [smem:[#allocation20_spill]] }
 0x2e2   : > { %s3854_s6 = sld [smem:[#allocation22_spill]]  ;;  %s3855_s25 = sld [smem:[#allocation23_spill]] }
 0x2e3   : > { %s3856_s26 = sld [smem:[#allocation24_spill]]  ;;  %s3857_s12 = smov %s2801_s13 }
 0x2e4   : > { %s3859_s13 = smov %s2805_s14  ;;  %s3860_s14 = smov %s3130_s30 }
 0x2e5   : > { %s3861_s15 = smov %s2813_s16  ;;  %s3862_s16 = smov %s2817_s17 }
 0x2e6   : > { %s3863_s17 = smov %s3119_s18  ;;  %s3864_s18 = smov %s2825_s19 }
 0x2e7   : > { %s3865_s19 = smov %s3850_s11  ;;  %s3866_s20 = smov %s3851_s28 }
 0x2e8   : > { %s3867_s21 = smov %s2845_s24  ;;  %s3868_s24 = smov %s3854_s6 }
 0x2e9   :  { %25 = sbr.rel (!%p3725_p13) target bundleno = 20 (0x14), region = 114 }
 0x2f0   :  { %2271 = vsyncpa [#allocation4], 1 }
 0x2f1   :  { %2273 = vsyncpa [#allocation4 + $0x1], 1 }
 0x2f2   :  { %2274 = vsyncpa [#allocation7], 1 }
 0x2f3   :  { %2276 = vsyncpa [#allocation7 + $0x1], 1 }
 0x2f4   :  { %2277 = vsyncpa [#allocation5], 1 }
 0x2f5   :  { %2279 = vsyncpa [#allocation5 + $0x1], 1 }
 0x2f6   :  { %2280 = vsyncpa [#allocation10], 1 }
 0x2f7   :  { %2282 = vsyncpa [#allocation10 + $0x1], 1 }

</bundles_post_ra>
